<compile_context>
chip_gen: v6e
topology: v6e:2x2x1
jax: 0.10.0
libtpu: 0.0.40
codegen_flags: <defaults>
</compile_context>

<pallas_src>
import functools

import jax
import jax.numpy as jnp
from jax.experimental import pallas as pl
from jax.experimental.pallas import tpu as pltpu


def _divrepr_kernel(e_ref, o_ref):
    # e_ref: (K, H, TB) f32 -- TB baskets, batch in the lane dimension.
    # o_ref: (1, TB)    f32 -- one logdet per lane.
    e = e_ref[...]
    K, H, TB = e.shape

    # Gram in (K, K, TB) layout, pure VPU work over the TB lanes:
    #   a[i, j, b] = sum_h e[i, h, b] * e[j, h, b]
    rows = []
    for i in range(K):                                    # K static -> fully unrolled
        rows.append(jnp.sum(e * e[i][None, :, :], axis=1))        # (K, TB)
    a = jnp.stack(rows, axis=0)                           # (K, K, TB), symmetric

    # logdet = sum_i log(pivot_i) via unrolled elimination (Schur complements).
    # Because the Gram is symmetric, row i also serves as column i, so each step
    # is a single rank-1 update on the (K, K, TB) stack.
    logdet = jnp.zeros((1, TB), jnp.float32)
    for i in range(K):
        r = a[i]                                          # (K, TB) == row i == col i
        pivot = jnp.maximum(r[i:i + 1, :], jnp.float32(1e-30))    # (1, TB)
        logdet = logdet + jnp.log(pivot)                  # EUP work, lane-parallel
        inv_p = 1.0 / pivot                               # exact division (precision)
        a = a - (r * inv_p)[:, None, :] * r[None, :, :]

    o_ref[...] = logdet


@functools.partial(jax.jit, static_argnames=("tb",))
def div_repr_x_forward(items, full_item_embedding, *, tb=512):
    """items: [B, K] int, full_item_embedding: [V+1, H] f32 -> [B] f32 logdet."""
    # TODO(synk): fuse this gather in-kernel (items prefetched to SMEM, small
    # embedding table resident in VMEM) to avoid one HBM round trip.
    item_emb = jnp.take(full_item_embedding, items, axis=0).astype(jnp.float32)  # [B,K,H]
    B, K, H = item_emb.shape

    # Pack TB baskets per grid step; TB is a multiple of 128 (lane width), capped
    # at the padded batch so small batches still run a single grid step.
    b128 = pl.cdiv(B, 128) * 128
    tb_eff = min(tb, b128)
    b_pad = pl.cdiv(B, tb_eff) * tb_eff
    if b_pad != B:
        item_emb = jnp.concatenate(
            [item_emb, jnp.zeros((b_pad - B, K, H), jnp.float32)], axis=0)

    # Layout plumbing in the wrapper: put the batch into the lane (last) dim.
    e_t = jnp.transpose(item_emb, (1, 2, 0))              # (K, H, B_pad)

    out = pl.pallas_call(
        _divrepr_kernel,
        out_shape=jax.ShapeDtypeStruct((1, b_pad), jnp.float32),
        grid=(b_pad // tb_eff,),
        in_specs=[pl.BlockSpec((K, H, tb_eff), lambda b: (0, 0, b))],
        out_specs=pl.BlockSpec((1, tb_eff), lambda b: (0, b)),
        compiler_params=pltpu.CompilerParams(
            dimension_semantics=("parallel",),
            vmem_limit_bytes=64 * 1024 * 1024),
    )(e_t)
    return out[0, :B]


if __name__ == "__main__":
    NUM_ITEMS = 50        # engine.itemTotal
    HIDDEN = 32           # engine.hidden_size
    B, K = 2, 8           # two baskets of 8 items each

    key = jax.random.PRNGKey(0)
    k_emb, k_items = jax.random.split(key)

    # nn.init.normal_(item_embedding, mean=1, std=0.05)
    item_embedding = 1.0 + 0.05 * jax.random.normal(
        k_emb, (NUM_ITEMS, HIDDEN), dtype=jnp.float32)
    # full_item_embedding: rows [:NUM_ITEMS] = item_embedding, last row = zero mask row
    full_item_embedding = jnp.concatenate(
        [item_embedding, jnp.zeros((1, HIDDEN), dtype=jnp.float32)], axis=0)

    # Distinct items per basket: duplicate items make the Gram singular
    # (logdet = -inf), which the no-pivot elimination does not reproduce; the PD
    # case is the module's intended regime.
    item_keys = jax.random.split(k_items, B)
    items = jnp.stack(
        [jax.random.permutation(k, NUM_ITEMS)[:K] for k in item_keys]
    ).astype(jnp.int32)

    out = div_repr_x_forward(items, full_item_embedding)
    out = jax.block_until_ready(out)

    # Reference: torch.logdet equivalent.
    emb_ref = jnp.take(full_item_embedding, items, axis=0)
    gram_ref = jnp.einsum('bkh,bjh->bkj', emb_ref, emb_ref)
    _, ref_logdet = jnp.linalg.slogdet(gram_ref)
    assert jnp.allclose(out, ref_logdet, rtol=1e-2, atol=1e-2), (out, ref_logdet)

    print("KERNEL_OK")
</pallas_src>

<mosaic_0001>
module attributes {stable_mosaic.version = 11 : i64} {
  func.func @_divrepr_kernel(%arg0: i32, %arg1: memref<8x32x128xf32, #tpu.memory_space<vmem>>, %arg2: memref<1x128xf32, #tpu.memory_space<vmem>>) attributes {dimension_semantics = [#tpu.dimension_semantics<parallel>], iteration_bounds = array<i64: 1>, scalar_prefetch = 0 : i64, scratch_operands = 0 : i64, tpu.core_type = #tpu.core_type<tc>, window_params = [{transform_indices = @transform_0, window_bounds = array<i64: 8, 32, 128>}, {transform_indices = @transform_1, window_bounds = array<i64: 1, 128>}]} {
    %c0 = arith.constant 0 : index
    %c0_0 = arith.constant 0 : index
    %c0_1 = arith.constant 0 : index
    %0 = vector.load %arg1[%c0, %c0_0, %c0_1] : memref<8x32x128xf32, #tpu.memory_space<vmem>>, vector<8x32x128xf32>
    %1 = vector.extract_strided_slice %0 {offsets = [0, 0, 0], sizes = [1, 32, 128], strides = [1, 1, 1]} : vector<8x32x128xf32> to vector<1x32x128xf32>
    %2 = vector.shape_cast %1 : vector<1x32x128xf32> to vector<32x128xf32>
    %3 = vector.shape_cast %2 : vector<32x128xf32> to vector<1x32x128xf32>
    %4 = vector.broadcast %3 : vector<1x32x128xf32> to vector<8x32x128xf32>
    %5 = arith.mulf %0, %4 : vector<8x32x128xf32>
    %cst = arith.constant dense<0.000000e+00> : vector<8x128xf32>
    %6 = vector.multi_reduction <add>, %5, %cst [1] : vector<8x32x128xf32> to vector<8x128xf32>
    %7 = vector.extract_strided_slice %0 {offsets = [1, 0, 0], sizes = [1, 32, 128], strides = [1, 1, 1]} : vector<8x32x128xf32> to vector<1x32x128xf32>
    %8 = vector.shape_cast %7 : vector<1x32x128xf32> to vector<32x128xf32>
    %9 = vector.shape_cast %8 : vector<32x128xf32> to vector<1x32x128xf32>
    %10 = vector.broadcast %9 : vector<1x32x128xf32> to vector<8x32x128xf32>
    %11 = arith.mulf %0, %10 : vector<8x32x128xf32>
    %cst_2 = arith.constant dense<0.000000e+00> : vector<8x128xf32>
    %12 = vector.multi_reduction <add>, %11, %cst_2 [1] : vector<8x32x128xf32> to vector<8x128xf32>
    %13 = vector.extract_strided_slice %0 {offsets = [2, 0, 0], sizes = [1, 32, 128], strides = [1, 1, 1]} : vector<8x32x128xf32> to vector<1x32x128xf32>
    %14 = vector.shape_cast %13 : vector<1x32x128xf32> to vector<32x128xf32>
    %15 = vector.shape_cast %14 : vector<32x128xf32> to vector<1x32x128xf32>
    %16 = vector.broadcast %15 : vector<1x32x128xf32> to vector<8x32x128xf32>
    %17 = arith.mulf %0, %16 : vector<8x32x128xf32>
    %cst_3 = arith.constant dense<0.000000e+00> : vector<8x128xf32>
    %18 = vector.multi_reduction <add>, %17, %cst_3 [1] : vector<8x32x128xf32> to vector<8x128xf32>
    %19 = vector.extract_strided_slice %0 {offsets = [3, 0, 0], sizes = [1, 32, 128], strides = [1, 1, 1]} : vector<8x32x128xf32> to vector<1x32x128xf32>
    %20 = vector.shape_cast %19 : vector<1x32x128xf32> to vector<32x128xf32>
    %21 = vector.shape_cast %20 : vector<32x128xf32> to vector<1x32x128xf32>
    %22 = vector.broadcast %21 : vector<1x32x128xf32> to vector<8x32x128xf32>
    %23 = arith.mulf %0, %22 : vector<8x32x128xf32>
    %cst_4 = arith.constant dense<0.000000e+00> : vector<8x128xf32>
    %24 = vector.multi_reduction <add>, %23, %cst_4 [1] : vector<8x32x128xf32> to vector<8x128xf32>
    %25 = vector.extract_strided_slice %0 {offsets = [4, 0, 0], sizes = [1, 32, 128], strides = [1, 1, 1]} : vector<8x32x128xf32> to vector<1x32x128xf32>
    %26 = vector.shape_cast %25 : vector<1x32x128xf32> to vector<32x128xf32>
    %27 = vector.shape_cast %26 : vector<32x128xf32> to vector<1x32x128xf32>
    %28 = vector.broadcast %27 : vector<1x32x128xf32> to vector<8x32x128xf32>
    %29 = arith.mulf %0, %28 : vector<8x32x128xf32>
    %cst_5 = arith.constant dense<0.000000e+00> : vector<8x128xf32>
    %30 = vector.multi_reduction <add>, %29, %cst_5 [1] : vector<8x32x128xf32> to vector<8x128xf32>
    %31 = vector.extract_strided_slice %0 {offsets = [5, 0, 0], sizes = [1, 32, 128], strides = [1, 1, 1]} : vector<8x32x128xf32> to vector<1x32x128xf32>
    %32 = vector.shape_cast %31 : vector<1x32x128xf32> to vector<32x128xf32>
    %33 = vector.shape_cast %32 : vector<32x128xf32> to vector<1x32x128xf32>
    %34 = vector.broadcast %33 : vector<1x32x128xf32> to vector<8x32x128xf32>
    %35 = arith.mulf %0, %34 : vector<8x32x128xf32>
    %cst_6 = arith.constant dense<0.000000e+00> : vector<8x128xf32>
    %36 = vector.multi_reduction <add>, %35, %cst_6 [1] : vector<8x32x128xf32> to vector<8x128xf32>
    %37 = vector.extract_strided_slice %0 {offsets = [6, 0, 0], sizes = [1, 32, 128], strides = [1, 1, 1]} : vector<8x32x128xf32> to vector<1x32x128xf32>
    %38 = vector.shape_cast %37 : vector<1x32x128xf32> to vector<32x128xf32>
    %39 = vector.shape_cast %38 : vector<32x128xf32> to vector<1x32x128xf32>
    %40 = vector.broadcast %39 : vector<1x32x128xf32> to vector<8x32x128xf32>
    %41 = arith.mulf %0, %40 : vector<8x32x128xf32>
    %cst_7 = arith.constant dense<0.000000e+00> : vector<8x128xf32>
    %42 = vector.multi_reduction <add>, %41, %cst_7 [1] : vector<8x32x128xf32> to vector<8x128xf32>
    %43 = vector.extract_strided_slice %0 {offsets = [7, 0, 0], sizes = [1, 32, 128], strides = [1, 1, 1]} : vector<8x32x128xf32> to vector<1x32x128xf32>
    %44 = vector.shape_cast %43 : vector<1x32x128xf32> to vector<32x128xf32>
    %45 = vector.shape_cast %44 : vector<32x128xf32> to vector<1x32x128xf32>
    %46 = vector.broadcast %45 : vector<1x32x128xf32> to vector<8x32x128xf32>
    %47 = arith.mulf %0, %46 : vector<8x32x128xf32>
    %cst_8 = arith.constant dense<0.000000e+00> : vector<8x128xf32>
    %48 = vector.multi_reduction <add>, %47, %cst_8 [1] : vector<8x32x128xf32> to vector<8x128xf32>
    %49 = vector.shape_cast %6 : vector<8x128xf32> to vector<1x8x128xf32>
    %50 = vector.shape_cast %12 : vector<8x128xf32> to vector<1x8x128xf32>
    %51 = vector.shape_cast %18 : vector<8x128xf32> to vector<1x8x128xf32>
    %52 = vector.shape_cast %24 : vector<8x128xf32> to vector<1x8x128xf32>
    %53 = vector.shape_cast %30 : vector<8x128xf32> to vector<1x8x128xf32>
    %54 = vector.shape_cast %36 : vector<8x128xf32> to vector<1x8x128xf32>
    %55 = vector.shape_cast %42 : vector<8x128xf32> to vector<1x8x128xf32>
    %56 = vector.shape_cast %48 : vector<8x128xf32> to vector<1x8x128xf32>
    %57 = tpu.concatenate %49, %50, %51, %52, %53, %54, %55, %56 in 0 : vector<1x8x128xf32>, vector<1x8x128xf32>, vector<1x8x128xf32>, vector<1x8x128xf32>, vector<1x8x128xf32>, vector<1x8x128xf32>, vector<1x8x128xf32>, vector<1x8x128xf32> -> vector<8x8x128xf32>
    %cst_9 = arith.constant 0.000000e+00 : f32
    %58 = vector.broadcast %cst_9 : f32 to vector<1x128xf32>
    %59 = vector.extract_strided_slice %57 {offsets = [0, 0, 0], sizes = [1, 8, 128], strides = [1, 1, 1]} : vector<8x8x128xf32> to vector<1x8x128xf32>
    %60 = vector.shape_cast %59 : vector<1x8x128xf32> to vector<8x128xf32>
    %61 = vector.extract_strided_slice %60 {offsets = [0, 0], sizes = [1, 128], strides = [1, 1]} : vector<8x128xf32> to vector<1x128xf32>
    %cst_10 = arith.constant 1.000000e-30 : f32
    %62 = vector.broadcast %cst_10 : f32 to vector<1x128xf32>
    %63 = arith.maximumf %61, %62 : vector<1x128xf32>
    %64 = math.log %63 : vector<1x128xf32>
    %65 = arith.addf %58, %64 : vector<1x128xf32>
    %cst_11 = arith.constant 1.000000e+00 : f32
    %66 = vector.broadcast %cst_11 : f32 to vector<1x128xf32>
    %67 = arith.divf %66, %63 : vector<1x128xf32>
    %68 = vector.broadcast %67 : vector<1x128xf32> to vector<8x128xf32>
    %69 = arith.mulf %60, %68 : vector<8x128xf32>
    %70 = vector.shape_cast %69 : vector<8x128xf32> to vector<8x1x128xf32>
    %71 = vector.shape_cast %60 : vector<8x128xf32> to vector<1x8x128xf32>
    %72 = vector.broadcast %70 : vector<8x1x128xf32> to vector<8x8x128xf32>
    %73 = vector.broadcast %71 : vector<1x8x128xf32> to vector<8x8x128xf32>
    %74 = arith.mulf %72, %73 : vector<8x8x128xf32>
    %75 = arith.subf %57, %74 : vector<8x8x128xf32>
    %76 = vector.extract_strided_slice %75 {offsets = [1, 0, 0], sizes = [1, 8, 128], strides = [1, 1, 1]} : vector<8x8x128xf32> to vector<1x8x128xf32>
    %77 = vector.shape_cast %76 : vector<1x8x128xf32> to vector<8x128xf32>
    %78 = vector.extract_strided_slice %77 {offsets = [1, 0], sizes = [1, 128], strides = [1, 1]} : vector<8x128xf32> to vector<1x128xf32>
    %cst_12 = arith.constant 1.000000e-30 : f32
    %79 = vector.broadcast %cst_12 : f32 to vector<1x128xf32>
    %80 = arith.maximumf %78, %79 : vector<1x128xf32>
    %81 = math.log %80 : vector<1x128xf32>
    %82 = arith.addf %65, %81 : vector<1x128xf32>
    %cst_13 = arith.constant 1.000000e+00 : f32
    %83 = vector.broadcast %cst_13 : f32 to vector<1x128xf32>
    %84 = arith.divf %83, %80 : vector<1x128xf32>
    %85 = vector.broadcast %84 : vector<1x128xf32> to vector<8x128xf32>
    %86 = arith.mulf %77, %85 : vector<8x128xf32>
    %87 = vector.shape_cast %86 : vector<8x128xf32> to vector<8x1x128xf32>
    %88 = vector.shape_cast %77 : vector<8x128xf32> to vector<1x8x128xf32>
    %89 = vector.broadcast %87 : vector<8x1x128xf32> to vector<8x8x128xf32>
    %90 = vector.broadcast %88 : vector<1x8x128xf32> to vector<8x8x128xf32>
    %91 = arith.mulf %89, %90 : vector<8x8x128xf32>
    %92 = arith.subf %75, %91 : vector<8x8x128xf32>
    %93 = vector.extract_strided_slice %92 {offsets = [2, 0, 0], sizes = [1, 8, 128], strides = [1, 1, 1]} : vector<8x8x128xf32> to vector<1x8x128xf32>
    %94 = vector.shape_cast %93 : vector<1x8x128xf32> to vector<8x128xf32>
    %95 = vector.extract_strided_slice %94 {offsets = [2, 0], sizes = [1, 128], strides = [1, 1]} : vector<8x128xf32> to vector<1x128xf32>
    %cst_14 = arith.constant 1.000000e-30 : f32
    %96 = vector.broadcast %cst_14 : f32 to vector<1x128xf32>
    %97 = arith.maximumf %95, %96 : vector<1x128xf32>
    %98 = math.log %97 : vector<1x128xf32>
    %99 = arith.addf %82, %98 : vector<1x128xf32>
    %cst_15 = arith.constant 1.000000e+00 : f32
    %100 = vector.broadcast %cst_15 : f32 to vector<1x128xf32>
    %101 = arith.divf %100, %97 : vector<1x128xf32>
    %102 = vector.broadcast %101 : vector<1x128xf32> to vector<8x128xf32>
    %103 = arith.mulf %94, %102 : vector<8x128xf32>
    %104 = vector.shape_cast %103 : vector<8x128xf32> to vector<8x1x128xf32>
    %105 = vector.shape_cast %94 : vector<8x128xf32> to vector<1x8x128xf32>
    %106 = vector.broadcast %104 : vector<8x1x128xf32> to vector<8x8x128xf32>
    %107 = vector.broadcast %105 : vector<1x8x128xf32> to vector<8x8x128xf32>
    %108 = arith.mulf %106, %107 : vector<8x8x128xf32>
    %109 = arith.subf %92, %108 : vector<8x8x128xf32>
    %110 = vector.extract_strided_slice %109 {offsets = [3, 0, 0], sizes = [1, 8, 128], strides = [1, 1, 1]} : vector<8x8x128xf32> to vector<1x8x128xf32>
    %111 = vector.shape_cast %110 : vector<1x8x128xf32> to vector<8x128xf32>
    %112 = vector.extract_strided_slice %111 {offsets = [3, 0], sizes = [1, 128], strides = [1, 1]} : vector<8x128xf32> to vector<1x128xf32>
    %cst_16 = arith.constant 1.000000e-30 : f32
    %113 = vector.broadcast %cst_16 : f32 to vector<1x128xf32>
    %114 = arith.maximumf %112, %113 : vector<1x128xf32>
    %115 = math.log %114 : vector<1x128xf32>
    %116 = arith.addf %99, %115 : vector<1x128xf32>
    %cst_17 = arith.constant 1.000000e+00 : f32
    %117 = vector.broadcast %cst_17 : f32 to vector<1x128xf32>
    %118 = arith.divf %117, %114 : vector<1x128xf32>
    %119 = vector.broadcast %118 : vector<1x128xf32> to vector<8x128xf32>
    %120 = arith.mulf %111, %119 : vector<8x128xf32>
    %121 = vector.shape_cast %120 : vector<8x128xf32> to vector<8x1x128xf32>
    %122 = vector.shape_cast %111 : vector<8x128xf32> to vector<1x8x128xf32>
    %123 = vector.broadcast %121 : vector<8x1x128xf32> to vector<8x8x128xf32>
    %124 = vector.broadcast %122 : vector<1x8x128xf32> to vector<8x8x128xf32>
    %125 = arith.mulf %123, %124 : vector<8x8x128xf32>
    %126 = arith.subf %109, %125 : vector<8x8x128xf32>
    %127 = vector.extract_strided_slice %126 {offsets = [4, 0, 0], sizes = [1, 8, 128], strides = [1, 1, 1]} : vector<8x8x128xf32> to vector<1x8x128xf32>
    %128 = vector.shape_cast %127 : vector<1x8x128xf32> to vector<8x128xf32>
    %129 = vector.extract_strided_slice %128 {offsets = [4, 0], sizes = [1, 128], strides = [1, 1]} : vector<8x128xf32> to vector<1x128xf32>
    %cst_18 = arith.constant 1.000000e-30 : f32
    %130 = vector.broadcast %cst_18 : f32 to vector<1x128xf32>
    %131 = arith.maximumf %129, %130 : vector<1x128xf32>
    %132 = math.log %131 : vector<1x128xf32>
    %133 = arith.addf %116, %132 : vector<1x128xf32>
    %cst_19 = arith.constant 1.000000e+00 : f32
    %134 = vector.broadcast %cst_19 : f32 to vector<1x128xf32>
    %135 = arith.divf %134, %131 : vector<1x128xf32>
    %136 = vector.broadcast %135 : vector<1x128xf32> to vector<8x128xf32>
    %137 = arith.mulf %128, %136 : vector<8x128xf32>
    %138 = vector.shape_cast %137 : vector<8x128xf32> to vector<8x1x128xf32>
    %139 = vector.shape_cast %128 : vector<8x128xf32> to vector<1x8x128xf32>
    %140 = vector.broadcast %138 : vector<8x1x128xf32> to vector<8x8x128xf32>
    %141 = vector.broadcast %139 : vector<1x8x128xf32> to vector<8x8x128xf32>
    %142 = arith.mulf %140, %141 : vector<8x8x128xf32>
    %143 = arith.subf %126, %142 : vector<8x8x128xf32>
    %144 = vector.extract_strided_slice %143 {offsets = [5, 0, 0], sizes = [1, 8, 128], strides = [1, 1, 1]} : vector<8x8x128xf32> to vector<1x8x128xf32>
    %145 = vector.shape_cast %144 : vector<1x8x128xf32> to vector<8x128xf32>
    %146 = vector.extract_strided_slice %145 {offsets = [5, 0], sizes = [1, 128], strides = [1, 1]} : vector<8x128xf32> to vector<1x128xf32>
    %cst_20 = arith.constant 1.000000e-30 : f32
    %147 = vector.broadcast %cst_20 : f32 to vector<1x128xf32>
    %148 = arith.maximumf %146, %147 : vector<1x128xf32>
    %149 = math.log %148 : vector<1x128xf32>
    %150 = arith.addf %133, %149 : vector<1x128xf32>
    %cst_21 = arith.constant 1.000000e+00 : f32
    %151 = vector.broadcast %cst_21 : f32 to vector<1x128xf32>
    %152 = arith.divf %151, %148 : vector<1x128xf32>
    %153 = vector.broadcast %152 : vector<1x128xf32> to vector<8x128xf32>
    %154 = arith.mulf %145, %153 : vector<8x128xf32>
    %155 = vector.shape_cast %154 : vector<8x128xf32> to vector<8x1x128xf32>
    %156 = vector.shape_cast %145 : vector<8x128xf32> to vector<1x8x128xf32>
    %157 = vector.broadcast %155 : vector<8x1x128xf32> to vector<8x8x128xf32>
    %158 = vector.broadcast %156 : vector<1x8x128xf32> to vector<8x8x128xf32>
    %159 = arith.mulf %157, %158 : vector<8x8x128xf32>
    %160 = arith.subf %143, %159 : vector<8x8x128xf32>
    %161 = vector.extract_strided_slice %160 {offsets = [6, 0, 0], sizes = [1, 8, 128], strides = [1, 1, 1]} : vector<8x8x128xf32> to vector<1x8x128xf32>
    %162 = vector.shape_cast %161 : vector<1x8x128xf32> to vector<8x128xf32>
    %163 = vector.extract_strided_slice %162 {offsets = [6, 0], sizes = [1, 128], strides = [1, 1]} : vector<8x128xf32> to vector<1x128xf32>
    %cst_22 = arith.constant 1.000000e-30 : f32
    %164 = vector.broadcast %cst_22 : f32 to vector<1x128xf32>
    %165 = arith.maximumf %163, %164 : vector<1x128xf32>
    %166 = math.log %165 : vector<1x128xf32>
    %167 = arith.addf %150, %166 : vector<1x128xf32>
    %cst_23 = arith.constant 1.000000e+00 : f32
    %168 = vector.broadcast %cst_23 : f32 to vector<1x128xf32>
    %169 = arith.divf %168, %165 : vector<1x128xf32>
    %170 = vector.broadcast %169 : vector<1x128xf32> to vector<8x128xf32>
    %171 = arith.mulf %162, %170 : vector<8x128xf32>
    %172 = vector.shape_cast %171 : vector<8x128xf32> to vector<8x1x128xf32>
    %173 = vector.shape_cast %162 : vector<8x128xf32> to vector<1x8x128xf32>
    %174 = vector.broadcast %172 : vector<8x1x128xf32> to vector<8x8x128xf32>
    %175 = vector.broadcast %173 : vector<1x8x128xf32> to vector<8x8x128xf32>
    %176 = arith.mulf %174, %175 : vector<8x8x128xf32>
    %177 = arith.subf %160, %176 : vector<8x8x128xf32>
    %178 = vector.extract_strided_slice %177 {offsets = [7, 0, 0], sizes = [1, 8, 128], strides = [1, 1, 1]} : vector<8x8x128xf32> to vector<1x8x128xf32>
    %179 = vector.shape_cast %178 : vector<1x8x128xf32> to vector<8x128xf32>
    %180 = vector.extract_strided_slice %179 {offsets = [7, 0], sizes = [1, 128], strides = [1, 1]} : vector<8x128xf32> to vector<1x128xf32>
    %cst_24 = arith.constant 1.000000e-30 : f32
    %181 = vector.broadcast %cst_24 : f32 to vector<1x128xf32>
    %182 = arith.maximumf %180, %181 : vector<1x128xf32>
    %183 = math.log %182 : vector<1x128xf32>
    %184 = arith.addf %167, %183 : vector<1x128xf32>
    %c0_25 = arith.constant 0 : index
    %c0_26 = arith.constant 0 : index
    %185 = vector.load %arg2[%c0_25, %c0_26] : memref<1x128xf32, #tpu.memory_space<vmem>>, vector<1x128xf32>
    tpu.vector_store %arg2[%c0_25, %c0_26], %184 {strides = array<i32>} : memref<1x128xf32, #tpu.memory_space<vmem>>, vector<1x128xf32>,
    return
  }
  func.func @transform_0(%arg0: i32) -> (i32, i32, i32) {
    %c0_i32 = arith.constant 0 : i32
    %c0_i32_0 = arith.constant 0 : i32
    %c0_i32_1 = arith.constant 0 : i32
    return %c0_i32, %c0_i32_0, %arg0 : i32, i32, i32
  }
  func.func @transform_1(%arg0: i32) -> (i32, i32) {
    %c0_i32 = arith.constant 0 : i32
    %c0_i32_0 = arith.constant 0 : i32
    return %c0_i32, %arg0 : i32, i32
  }
}

</mosaic_0001>

<bundles_post_ra>
// kernel: div_repr_x_forward.1
= control target key start
LH: loop header
LB: loop body
LE: loop exit
PB: predicated region body
PF: predicated region fallthrough
CT: control target
= control target key end

     0   :  { %vm562_vm0 = vcmask 1041409   ;;  %vm565_vm1 = vcmask 1042434   ;;  %vm568_vm2 = vcmask 1043459   ;;  %vm571_vm3 = vcmask 1044484   ;;  %s2644_s0 = inlined_call_operand.vmem [shape: f32[8,32,128], index: 0, kind: input, shape index: {}]   ;;  %s2645_s1 = inlined_call_operand.vmem [shape: f32[1,128], index: 1, kind: output, shape index: {}]  }
   0x1   :  { %v8_v0 = vld [vmem:[%s2644_s0] sm:$0xff]  ;;  %v9_v1 = vld [vmem:[%s2644_s0 + $0x8] sm:$0xff]  ;;  %v1514_v6 = vld [vmem:[%s2644_s0 + $0x10] sm:$0xff]  ;;  %vm574_vm4 = vcmask 1045509   ;;  %vm577_vm5 = vcmask 1046534   ;;  %vm580_vm6 = vcmask 1047559  }
   0x2   :  { %v1504_v2 = vld [vmem:[%s2644_s0 + $0x20] sm:$0xff]  ;;  %v1509_v3 = vld [vmem:[%s2644_s0 + $0x28] sm:$0xff]  ;;  %v40_v4 = vmul.f32 %v8_v0, %v8_v0  ;;  %v41_v5 = vmul.f32 %v9_v1, %v9_v1  ;;  %v1521_v9 = vld [vmem:[%s2644_s0 + $0x30] sm:$0xff]  ;;  %v42_v10 = vmul.f32 %v1514_v6, %v1514_v6 }
   0x3   :  { %v44_v7 = vmul.f32 %v1504_v2, %v8_v0  ;;  %v45_v8 = vmul.f32 %v1509_v3, %v9_v1  ;;  %v1528_v12 = vld [vmem:[%s2644_s0 + $0x18] sm:$0xff]  ;;  %v46_v13 = vmul.f32 %v1521_v9, %v1514_v6  ;;  %v1540_v16 = vld [vmem:[%s2644_s0 + $0x40] sm:$0xff]  ;;  %v1545_v17 = vld [vmem:[%s2644_s0 + $0x48] sm:$0xff] }
   0x4   :  { %v72_v11 = vadd.f32 %v41_v5, %v40_v4  ;;  %v1535_v15 = vld [vmem:[%s2644_s0 + $0x38] sm:$0xff]  ;;  %v1550_v18 = vld [vmem:[%s2644_s0 + $0x60] sm:$0xff]  ;;  %v1555_v19 = vld [vmem:[%s2644_s0 + $0x68] sm:$0xff]  ;;  %v43_v20 = vmul.f32 %v1528_v12, %v1528_v12  ;;  %v48_v26 = vmul.f32 %v1540_v16, %v8_v0  ;;  %v49_v27 = vmul.f32 %v1545_v17, %v9_v1 }
   0x5   :  { %v81_v14 = vadd.f32 %v45_v8, %v44_v7  ;;  %v1562_v22 = vld [vmem:[%s2644_s0 + $0x50] sm:$0xff]  ;;  %v1567_v23 = vld [vmem:[%s2644_s0 + $0x80] sm:$0xff]  ;;  %v1572_v24 = vld [vmem:[%s2644_s0 + $0x88] sm:$0xff]  ;;  %v47_v25 = vmul.f32 %v1535_v15, %v1528_v12  ;;  %v52_v33 = vmul.f32 %v1550_v18, %v8_v0  ;;  %v53_v34 = vmul.f32 %v1555_v19, %v9_v1 }
   0x6   :  { %v73_v21 = vadd.f32 %v72_v11, %v42_v10  ;;  %v1581_v29 = vld [vmem:[%s2644_s0 + $0xa0] sm:$0xff]  ;;  %v1586_v30 = vld [vmem:[%s2644_s0 + $0xa8] sm:$0xff]  ;;  %v1603_v35 = vld [vmem:[%s2644_s0 + $0x70] sm:$0xff]  ;;  %v50_v38 = vmul.f32 %v1562_v22, %v1514_v6  ;;  %v56_v39 = vmul.f32 %v1567_v23, %v8_v0  ;;  %v57_v40 = vmul.f32 %v1572_v24, %v9_v1 }
   0x7   :  { %v82_v28 = vadd.f32 %v81_v14, %v46_v13  ;;  %2693 = vst [vmem:[#allocation2_spill] sm:$0xff] %v1581_v29  ;;  %2694 = vst [vmem:[#allocation3_spill] sm:$0xff] %v1586_v30  ;;  %v1591_v31 = vld [vmem:[%s2644_s0 + $0xc0] sm:$0xff]  ;;  %v1596_v32 = vld [vmem:[%s2644_s0 + $0xc8] sm:$0xff]  ;;  %v60_v45 = vmul.f32 %v1581_v29, %v8_v0  ;;  %v61_v46 = vmul.f32 %v1586_v30, %v9_v1 }
   0x8   :  { %v1608_v36 = vld [vmem:[%s2644_s0 + $0xe0] sm:$0xff]  ;;  %v1613_v37 = vld [vmem:[%s2644_s0 + $0xe8] sm:$0xff]  ;;  %v74_v41 = vadd.f32 %v73_v21, %v43_v20  ;;  %v1622_v42 = vld [vmem:[%s2644_s0 + $0x58] sm:$0xff]  ;;  %v90_v48 = vadd.f32 %v49_v27, %v48_v26  ;;  %v64_v49 = vmul.f32 %v1591_v31, %v8_v0  ;;  %v65_v50 = vmul.f32 %v1596_v32, %v9_v1 }
   0x9   :  { %2695 = vst [vmem:[#allocation4_spill] sm:$0xff] %v1608_v36  ;;  %2696 = vst [vmem:[#allocation5_spill] sm:$0xff] %v1613_v37  ;;  %v1627_v43 = vld [vmem:[%s2644_s0 + $0x90] sm:$0xff]  ;;  %v83_v47 = vadd.f32 %v82_v28, %v47_v25  ;;  %v54_v52 = vmul.f32 %v1603_v35, %v1514_v6  ;;  %v68_v53 = vmul.f32 %v1608_v36, %v8_v0  ;;  %v1650_v56 = vld [vmem:[%s2644_s0 + $0x78] sm:$0xff] }
   0xa   :  { %2697 = vst [vmem:[#allocation6_spill] sm:$0xff] %v1627_v43  ;;  %v1632_v44 = vld [vmem:[%s2644_s0 + $0xb0] sm:$0xff]  ;;  %v69_v54 = vmul.f32 %v1613_v37, %v9_v1  ;;  %v99_v55 = vadd.f32 %v53_v34, %v52_v33  ;;  %v51_v58 = vmul.f32 %v1622_v42, %v1528_v12  ;;  %v58_v59 = vmul.f32 %v1627_v43, %v1514_v6  ;;  %v1666_v62 = vld [vmem:[%s2644_s0 + $0x98] sm:$0xff] }
   0xb   :  { %2698 = vst [vmem:[#allocation7_spill] sm:$0xff] %v1632_v44  ;;  %v1641_v51 = vld [vmem:[%s2644_s0 + $0xd0] sm:$0xff]  ;;  %v62_v60 = vmul.f32 %v1632_v44, %v1514_v6  ;;  %v75_v61 = vrot.slane %v74_v41, 4  ;;  %v1671_v63 = vld [vmem:[%s2644_s0 + $0xb8] sm:$0xff]  ;;  %v84_v0 = vrot.slane %v83_v47, 4  ;;  %v91_v1 = vadd.f32 %v90_v48, %v50_v38 }
   0xc   :  { %2699 = vst [vmem:[#allocation8_spill] sm:$0xff] %v1641_v51  ;;  %v1655_v57 = vld [vmem:[%s2644_s0 + $0xf0] sm:$0xff]  ;;  %2701 = vst [vmem:[#allocation10_spill] sm:$0xff] %v1671_v63  ;;  %v108_v4 = vadd.f32 %v57_v40, %v56_v39  ;;  %v117_v5 = vadd.f32 %v61_v46, %v60_v45  ;;  %v66_v7 = vmul.f32 %v1641_v51, %v1514_v6  ;;  %v1678_v10 = vld [vmem:[%s2644_s0 + $0xd8] sm:$0xff] }
   0xd   :  { %2700 = vst [vmem:[#allocation9_spill] sm:$0xff] %v1655_v57  ;;  %v126_v8 = vadd.f32 %v65_v50, %v64_v49  ;;  %v55_v11 = vmul.f32 %v1650_v56, %v1528_v12  ;;  %v70_v13 = vmul.f32 %v1655_v57, %v1514_v6  ;;  %v100_v14 = vadd.f32 %v99_v55, %v54_v52  ;;  %v1687_v21 = vld [vmem:[%s2644_s0 + $0xf8] sm:$0xff] }
   0xe   :  { %v135_v20 = vadd.f32 %v69_v54, %v68_v53  ;;  %v59_v25 = vmul.f32 %v1666_v62, %v1528_v12  ;;  %v63_v26 = vmul.f32 %v1671_v63, %v1528_v12  ;;  %v76_v27 = vadd.f32 %v75_v61, %v74_v41 }
   0xf   :  { %v85_v28 = vadd.f32 %v84_v0, %v83_v47  ;;  %v92_v33 = vadd.f32 %v91_v1, %v51_v58  ;;  %v109_v34 = vadd.f32 %v108_v4, %v58_v59  ;;  %v118_v38 = vadd.f32 %v117_v5, %v62_v60 }
  0x10   :  { %v67_v6 = vmul.f32 %v1678_v10, %v1528_v12  ;;  %v127_v39 = vadd.f32 %v126_v8, %v66_v7  ;;  %v71_v40 = vmul.f32 %v1687_v21, %v1528_v12  ;;  %v101_v45 = vadd.f32 %v100_v14, %v55_v11 }
  0x11   :  { %v136_v46 = vadd.f32 %v135_v20, %v70_v13  ;;  %v77_v48 = vrot.slane %v76_v27, 2  ;;  %v86_v49 = vrot.slane %v85_v28, 2  ;;  %v93_v50 = vrot.slane %v92_v33, 4 }
  0x12   :  { %v110_v52 = vadd.f32 %v109_v34, %v59_v25  ;;  %v119_v53 = vadd.f32 %v118_v38, %v63_v26  ;;  %v128_v54 = vadd.f32 %v127_v39, %v67_v6  ;;  %v102_v41 = vrot.slane %v101_v45, 4 }
  0x13   :  { %v137_v47 = vadd.f32 %v136_v46, %v71_v40  ;;  %v1697_v55 = vadd.f32 %v77_v48, %v76_v27  ;;  %v1699_v58 = vadd.f32 %v86_v49, %v85_v28  ;;  %v94_v59 = vadd.f32 %v93_v50, %v92_v33 }
  0x14   :  { %v111_v60 = vrot.slane %v110_v52, 4  ;;  %v120_v61 = vrot.slane %v119_v53, 4  ;;  %v129_v0 = vrot.slane %v128_v54, 4  ;;  %v103_v1 = vadd.f32 %v102_v41, %v101_v45 }
  0x15   :  { %v138_v12 = vrot.slane %v137_v47, 4  ;;  %v144_v5 = vmul.f32 %v1504_v2, %v1504_v2  ;;  %v95_v11 = vrot.slane %v94_v59, 2  ;;  %v145_v25 = vmul.f32 %v1509_v3, %v1509_v3 }
  0x16   :  { %v112_v13 = vadd.f32 %v111_v60, %v110_v52  ;;  %v121_v14 = vadd.f32 %v120_v61, %v119_v53  ;;  %v130_v20 = vadd.f32 %v129_v0, %v128_v54  ;;  %v148_v26 = vmul.f32 %v1540_v16, %v1504_v2 }
  0x17   :  { %v149_v27 = vmul.f32 %v1545_v17, %v1509_v3  ;;  %v104_v28 = vrot.slane %v103_v1, 2  ;;  %v139_v33 = vadd.f32 %v138_v12, %v137_v47  ;;  %v152_v34 = vmul.f32 %v1550_v18, %v1504_v2 }
  0x18   :  { %v153_v38 = vmul.f32 %v1555_v19, %v1509_v3  ;;  %v156_v6 = vmul.f32 %v1567_v23, %v1504_v2  ;;  %v157_v39 = vmul.f32 %v1572_v24, %v1509_v3  ;;  %v160_v40 = vmul.f32 %v1581_v29, %v1504_v2 }
  0x19   :  { %v161_v45 = vmul.f32 %v1586_v30, %v1509_v3  ;;  %v164_v46 = vmul.f32 %v1591_v31, %v1504_v2  ;;  %v165_v48 = vmul.f32 %v1596_v32, %v1509_v3  ;;  %v168_v49 = vmul.f32 %v1608_v36, %v1504_v2 }
  0x1a   :  { %v169_v50 = vmul.f32 %v1613_v37, %v1509_v3  ;;  %v146_v52 = vmul.f32 %v1521_v9, %v1521_v9  ;;  %v150_v53 = vmul.f32 %v1562_v22, %v1521_v9  ;;  %v172_v54 = vadd.f32 %v145_v25, %v144_v5 }
  0x1b   :  { %v181_v41 = vadd.f32 %v149_v27, %v148_v26  ;;  %v113_v47 = vrot.slane %v112_v13, 2  ;;  %v122_v60 = vrot.slane %v121_v14, 2  ;;  %v154_v61 = vmul.f32 %v1603_v35, %v1521_v9 }
  0x1c   :  { %v190_v0 = vadd.f32 %v153_v38, %v152_v34  ;;  %v158_v2 = vmul.f32 %v1627_v43, %v1521_v9  ;;  %v162_v3 = vmul.f32 %v1632_v44, %v1521_v9  ;;  %v166_v12 = vmul.f32 %v1641_v51, %v1521_v9 }
  0x1d   :  { %v199_v8 = vadd.f32 %v157_v39, %v156_v6  ;;  %v170_v5 = vmul.f32 %v1655_v57, %v1521_v9  ;;  %v208_v25 = vadd.f32 %v161_v45, %v160_v40  ;;  %v217_v26 = vadd.f32 %v165_v48, %v164_v46 }
  0x1e   :  { %v226_v27 = vadd.f32 %v169_v50, %v168_v49  ;;  %v147_v7 = vmul.f32 %v1535_v15, %v1535_v15  ;;  %v151_v34 = vmul.f32 %v1622_v42, %v1535_v15  ;;  %v173_v38 = vadd.f32 %v172_v54, %v146_v52 }
  0x1f   :  { %v182_v4 = vadd.f32 %v181_v41, %v150_v53  ;;  %v96_v43 = vadd.f32 %v95_v11, %v94_v59  ;;  %v131_v44 = vrot.slane %v130_v20, 2  ;;  %v155_v51 = vmul.f32 %v1650_v56, %v1535_v15 }
  0x20   :  { %v191_v6 = vadd.f32 %v190_v0, %v154_v61  ;;  %v159_v9 = vmul.f32 %v1666_v62, %v1535_v15  ;;  %v163_v39 = vmul.f32 %v1671_v63, %v1535_v15  ;;  %v167_v40 = vmul.f32 %v1678_v10, %v1535_v15 }
  0x21   :  { %v200_v45 = vadd.f32 %v199_v8, %v158_v2  ;;  %v171_v46 = vmul.f32 %v1687_v21, %v1535_v15  ;;  %v209_v48 = vadd.f32 %v208_v25, %v162_v3  ;;  %v218_v59 = vadd.f32 %v217_v26, %v166_v12 }
  0x22   :  { %v227_v11 = vadd.f32 %v226_v27, %v170_v5  ;;  %v1759_v49 = vadd.f32 %v104_v28, %v103_v1  ;;  %v140_v50 = vrot.slane %v139_v33, 2  ;;  %v174_v52 = vadd.f32 %v173_v38, %v147_v7  ;;  %v2707_v5 = vld [vmem:[#allocation6_spill] sm:$0xff] }
  0x23   :  { %v183_v53 = vadd.f32 %v182_v4, %v151_v34  ;;  %v97_v54 = vrot.slane %v96_v43, 1  ;;  %v1761_v41 = vadd.f32 %v113_v47, %v112_v13  ;;  %v1763_v61 = vadd.f32 %v122_v60, %v121_v14 }
  0x24   :  { %v192_v0 = vadd.f32 %v191_v6, %v155_v51  ;;  %v2702_v8 = vrot.slane %v1697_v55, 1  ;;  %v1770_v15 = vadd.f32 %v131_v44, %v130_v20  ;;  %v201_v3 = vadd.f32 %v200_v45, %v159_v9 }
  0x25   :  { %v2703_v12 = vlaneseq  ;;  %v2705_v4 = vrot.slane %v1699_v58, 1  ;;  %v210_v13 = vadd.f32 %v209_v48, %v163_v39  ;;  %v219_v14 = vadd.f32 %v218_v59, %v167_v40 }
  0x26   :  { %v1768_v2 = vadd.f32 %v2702_v8, %v1697_v55  ;;  %v228_v28 = vadd.f32 %v227_v11, %v171_v46  ;;  %v1781_v47 = vadd.f32 %v140_v50, %v139_v33  ;;  %v175_v55 = vrot.slane %v174_v52, 4 }
  0x27   :  { %v1773_v1 = vshrl.u32 %v2703_v12, 7  ;;  %v1778_v7 = vadd.f32 %v2705_v4, %v1699_v58  ;;  %v184_v60 = vrot.slane %v183_v53, 4  ;;  %v1783_v44 = vadd.f32 %v97_v54, %v96_v43 }
  0x28   :  { %v115_v20 = vrot.slane %v1761_v41, 1  ;;  %v193_v25 = vrot.slane %v192_v0, 4  ;;  %v202_v58 = vrot.slane %v201_v3, 4  ;;  %v235_v27 = vmul.f32 %v1540_v16, %v1540_v16 }
  0x29   :  { %2704 = vst [vmem:[#allocation11_spill] sm:$0xff] %v1773_v1  ;;  %2706 = vst [vmem:[#allocation12_spill] sm:$0xff] %v1783_v44  ;;  %v236_v34 = vmul.f32 %v1545_v17, %v1545_v17  ;;  %v211_v33 = vrot.slane %v210_v13, 4  ;;  %v220_v38 = vrot.slane %v219_v14, 4  ;;  %v229_v6 = vrot.slane %v228_v28, 4 }
  0x2a   :  { %v237_v43 = vmul.f32 %v1562_v22, %v1562_v22  ;;  %v176_v9 = vadd.f32 %v175_v55, %v174_v52  ;;  %v185_v39 = vadd.f32 %v184_v60, %v183_v53  ;;  %v239_v40 = vmul.f32 %v1550_v18, %v1540_v16 }
  0x2b   :  { %v240_v45 = vmul.f32 %v1555_v19, %v1545_v17  ;;  %v194_v46 = vadd.f32 %v193_v25, %v192_v0  ;;  %v238_v48 = vmul.f32 %v1622_v42, %v1622_v42  ;;  %v243_v59 = vmul.f32 %v1567_v23, %v1540_v16 }
  0x2c   :  { %v244_v11 = vmul.f32 %v1572_v24, %v1545_v17  ;;  %v203_v50 = vadd.f32 %v202_v58, %v201_v3  ;;  %v247_v52 = vmul.f32 %v1581_v29, %v1540_v16  ;;  %v248_v53 = vmul.f32 %v1586_v30, %v1545_v17  ;;  %v2708_v29 = vld [vmem:[#allocation7_spill] sm:$0xff] }
  0x2d   :  { %v251_v54 = vmul.f32 %v1591_v31, %v1540_v16  ;;  %v252_v0 = vmul.f32 %v1596_v32, %v1545_v17  ;;  %v255_v8 = vmul.f32 %v1608_v36, %v1540_v16  ;;  %v256_v12 = vmul.f32 %v1613_v37, %v1545_v17  ;;  %v2709_v36 = vld [vmem:[#allocation8_spill] sm:$0xff] }
  0x2e   :  { %v259_v4 = vadd.f32 %v236_v34, %v235_v27  ;;  %v212_v3 = vadd.f32 %v211_v33, %v210_v13  ;;  %v221_v55 = vadd.f32 %v220_v38, %v219_v14  ;;  %v241_v60 = vmul.f32 %v1603_v35, %v1562_v22 }
  0x2f   :  { %v268_v25 = vadd.f32 %v240_v45, %v239_v40  ;;  %v177_v58 = vrot.slane %v176_v9, 2  ;;  %v230_v26 = vadd.f32 %v229_v6, %v228_v28  ;;  %v245_v51 = vmul.f32 %v2707_v5, %v1562_v22 }
  0x30   :  { %v277_v1 = vadd.f32 %v244_v11, %v243_v59  ;;  %v186_v30 = vrot.slane %v185_v39, 2  ;;  %v249_v16 = vmul.f32 %v2708_v29, %v1562_v22  ;;  %v253_v17 = vmul.f32 %v2709_v36, %v1562_v22 }
  0x31   :  { %v286_v27 = vadd.f32 %v248_v53, %v247_v52  ;;  %v257_v13 = vmul.f32 %v1655_v57, %v1562_v22  ;;  %v260_v14 = vadd.f32 %v259_v4, %v237_v43  ;;  %v295_v34 = vadd.f32 %v252_v0, %v251_v54 }
  0x32   :  { %v304_v33 = vadd.f32 %v256_v12, %v255_v8  ;;  %v195_v38 = vrot.slane %v194_v46, 2  ;;  %v204_v28 = vrot.slane %v203_v50, 2  ;;  %v242_v6 = vmul.f32 %v1650_v56, %v1622_v42 }
  0x33   :  { %v269_v40 = vadd.f32 %v268_v25, %v241_v60  ;;  %v213_v45 = vrot.slane %v212_v3, 2  ;;  %v222_v59 = vrot.slane %v221_v55, 2  ;;  %v246_v11 = vmul.f32 %v1666_v62, %v1622_v42 }
  0x34   :  { %v278_v37 = vadd.f32 %v277_v1, %v245_v51  ;;  %v231_v29 = vrot.slane %v230_v26, 2  ;;  %v250_v52 = vmul.f32 %v1671_v63, %v1622_v42  ;;  %v254_v22 = vmul.f32 %v1678_v10, %v1622_v42 }
  0x35   :  { %v287_v43 = vadd.f32 %v286_v27, %v249_v16  ;;  %v258_v53 = vmul.f32 %v1687_v21, %v1622_v42  ;;  %v261_v54 = vadd.f32 %v260_v14, %v238_v48  ;;  %v296_v0 = vadd.f32 %v295_v34, %v253_v17 }
  0x36   :  { %v305_v8 = vadd.f32 %v304_v33, %v257_v13  ;;  %v2710_v12 = vrot.slane %v1759_v49, 1  ;;  %v1842_v1 = vadd.f32 %v115_v20, %v1761_v41  ;;  %v142_v51 = vrot.slane %v1781_v47, 1 }
  0x37   :  { %v270_v60 = vadd.f32 %v269_v40, %v242_v6  ;;  %v178_v25 = vadd.f32 %v177_v58, %v176_v9  ;;  %v187_v57 = vadd.f32 %v186_v30, %v185_v39  ;;  %v196_v16 = vadd.f32 %v195_v38, %v194_v46 }
  0x38   :  { %v1839_v4 = vadd.f32 %v2710_v12, %v1759_v49  ;;  %2712 = vst [vmem:[#allocation8_spill] sm:$0xff] %v1842_v1  ;;  %v279_v27 = vadd.f32 %v278_v37, %v246_v11  ;;  %v205_v63 = vadd.f32 %v204_v28, %v203_v50  ;;  %v214_v42 = vadd.f32 %v213_v45, %v212_v3 }
  0x39   :  { %v223_v48 = vadd.f32 %v222_v59, %v221_v55  ;;  %v288_v17 = vadd.f32 %v287_v43, %v250_v52  ;;  %v232_v13 = vadd.f32 %v231_v29, %v230_v26  ;;  %v262_v14 = vrot.slane %v261_v54, 4 }
  0x3a   :  { %2711 = vst [vmem:[#allocation6_spill] sm:$0xff] %v1839_v4  ;;  %v297_v34 = vadd.f32 %v296_v0, %v254_v22  ;;  %v306_v33 = vadd.f32 %v305_v8, %v258_v53  ;;  %v2713_v49 = vrot.slane %v1763_v61, 1  ;;  %v2714_v20 = vrot.slane %v1770_v15, 1 }
  0x3b   :  { %v1856_v37 = vadd.f32 %v142_v51, %v1781_v47  ;;  %v271_v9 = vrot.slane %v270_v60, 4  ;;  %v179_v29 = vrot.slane %v178_v25, 1  ;;  %v188_v26 = vrot.slane %v187_v57, 1 }
  0x3c   :  { %v1848_v41 = vadd.f32 %v2713_v49, %v1763_v61  ;;  %v1853_v30 = vadd.f32 %v2714_v20, %v1770_v15  ;;  %v197_v39 = vrot.slane %v196_v16, 1  ;;  %v280_v46 = vrot.slane %v279_v27, 4 }
  0x3d   :  { %v206_v50 = vrot.slane %v205_v63, 1  ;;  %v215_v3 = vrot.slane %v214_v42, 1  ;;  %v224_v55 = vrot.slane %v223_v48, 1  ;;  %v289_v58 = vrot.slane %v288_v17, 4 }
  0x3e   :  { %v233_v61 = vrot.slane %v232_v13, 1  ;;  %v263_v38 = vadd.f32 %v262_v14, %v261_v54  ;;  %v298_v28 = vrot.slane %v297_v34, 4  ;;  %v307_v6 = vrot.slane %v306_v33, 4 }
  0x3f   :  { %v272_v15 = vadd.f32 %v271_v9, %v270_v60  ;;  %v325_v47 = vmul.f32 %v1591_v31, %v1550_v18  ;;  %v326_v40 = vmul.f32 %v1596_v32, %v1555_v19  ;;  %v2664_v45 = vmax.f32 %v1768_v2, 1e-30 }
  0x40   :  { %v1863_v59 = vadd.f32 %v179_v29, %v178_v25  ;;  %v1865_v11 = vadd.f32 %v188_v26, %v187_v57  ;;  %v1867_v52 = vadd.f32 %v197_v39, %v196_v16  ;;  %v281_v22 = vadd.f32 %v280_v46, %v279_v27 }
  0x41   :  { %v1869_v43 = vadd.f32 %v206_v50, %v205_v63  ;;  %v1871_v53 = vadd.f32 %v215_v3, %v214_v42  ;;  %v1873_v54 = vadd.f32 %v224_v55, %v223_v48  ;;  %v290_v0 = vadd.f32 %v289_v58, %v288_v17 }
  0x42   :  { %2715 = vst [vmem:[#allocation13_spill] sm:$0xff] %v1865_v11  ;;  %2716 = vst [vmem:[#allocation14_spill] sm:$0xff] %v1867_v52  ;;  %v264_v8 = vrot.slane %v263_v38, 2  ;;  %v299_v12 = vadd.f32 %v298_v28, %v297_v34  ;;  %v308_v51 = vadd.f32 %v307_v6, %v306_v33  ;;  %1455 = vrcp.f32 %v2664_v45 }
  0x43   :  { %2717 = vst [vmem:[#allocation15_spill] sm:$0xff] %v1873_v54  ;;  %v273_v60 = vrot.slane %v272_v15, 2  ;;  %v327_v57 = vmul.f32 %v2709_v36, %v1603_v35  ;;  %v360_v25 = vadd.f32 %v326_v40, %v325_v47  ;;  %v561_v16 = vrot.slane %v1778_v7, 7  ;;  %v2720_v47 = vld [vmem:[#allocation2_spill] sm:$0xff] }
  0x44   :  { %v1880_v63 = vadd.f32 %v233_v61, %v232_v13  ;;  %v282_v27 = vrot.slane %v281_v22, 2  ;;  %v1884_v42 = vmul.f32 %v1550_v18, %v1550_v18  ;;  %v564_v48 = vrot.slane %v1783_v44, 6 }
  0x45   :  { %v291_v17 = vrot.slane %v290_v0, 2  ;;  %v314_v14 = vmul.f32 %v1555_v19, %v1555_v19  ;;  %v563_v34 = vsel %vm562_vm0, %v561_v16, %v1768_v2  ;;  %v567_v33 = vrot.slane %v1839_v4, 5 }
  0x46   :  { %2718 = vst [vmem:[#allocation16_spill] sm:$0xff] %v1880_v63  ;;  %v300_v49 = vrot.slane %v299_v12, 2  ;;  %v309_v20 = vrot.slane %v308_v51, 2  ;;  %v1894_v13 = vmul.f32 %v1603_v35, %v1603_v35  ;;  %v566_v9 = vsel %vm565_vm1, %v564_v48, %v563_v34 }
  0x47   :  { %v265_v29 = vadd.f32 %v264_v8, %v263_v38  ;;  %v274_v26 = vadd.f32 %v273_v60, %v272_v15  ;;  %v328_v39 = vmul.f32 %v1678_v10, %v1650_v56  ;;  %v361_v46 = vadd.f32 %v360_v25, %v327_v57 }
  0x48   :  { %v283_v50 = vadd.f32 %v282_v27, %v281_v22  ;;  %v1901_v3 = vmul.f32 %v1650_v56, %v1650_v56  ;;  %v317_v55 = vmul.f32 %v1567_v23, %v1550_v18  ;;  %v570_v58 = vrot.slane %v1842_v1, 4  ;;  %v2721_v22 = vld [vmem:[#allocation3_spill] sm:$0xff] }
  0x49   :  { %v292_v61 = vadd.f32 %v291_v17, %v290_v0  ;;  %v318_v28 = vmul.f32 %v1572_v24, %v1555_v19  ;;  %v569_v38 = vsel %vm568_vm2, %v567_v33, %v566_v9  ;;  %v301_v6 = vadd.f32 %v300_v49, %v299_v12  ;;  %v2722_v27 = vld [vmem:[#allocation11_spill] sm:$0xff] }
  0x4a   :  { %v1909_v15 = vadd.f32 %v309_v20, %v308_v51  ;;  %v321_v40 = vmul.f32 %v2720_v47, %v1550_v18  ;;  %v322_v8 = vmul.f32 %v2721_v22, %v1555_v19  ;;  %v266_v60 = vrot.slane %v265_v29, 1  ;;  %v2724_v33 = vld [vmem:[#allocation7_spill] sm:$0xff] }
  0x4b   :  { %v275_v57 = vrot.slane %v274_v26, 1  ;;  %v362_v25 = vadd.f32 %v361_v46, %v328_v39  ;;  %v573_v0 = vrot.slane %v1848_v41, 3  ;;  %v284_v16 = vrot.slane %v283_v50, 1  ;;  %v2725_v39 = vld [vmem:[#allocation10_spill] sm:$0xff] }
  0x4c   :  { %2719 = vst [vmem:[#allocation17_spill] sm:$0xff] %v1909_v15  ;;  %v1917_v48 = vsub.s32 0, %v2722_v27  ;;  %v572_v17 = vsel %vm571_vm3, %v570_v58, %v569_v38  ;;  %v293_v12 = vrot.slane %v292_v61, 1  ;;  %v319_v51 = vmul.f32 %v2707_v5, %v1603_v35  ;;  %v2730_v15 = vld [vmem:[#allocation4_spill] sm:$0xff] }
  0x4d   :  { %v1924_v34 = vmul.f32 %v1666_v62, %v1650_v56  ;;  %v323_v49 = vmul.f32 %v2724_v33, %v1603_v35  ;;  %v302_v20 = vrot.slane %v301_v6, 1  ;;  %v324_v46 = vmul.f32 %v2725_v39, %v1650_v56 }
  0x4e   :  { %2723 = vst [vmem:[#allocation2_spill] sm:$0xff] %v1917_v48  ;;  %v576_v58 = vrot.slane %v1853_v30, 2  ;;  %v1932_v27 = vadd.f32 %v266_v60, %v265_v29  ;;  %v363_v45 = vrot.slane %v362_v25, 4  ;;  %v575_v4 = vsel %vm574_vm4, %v573_v0, %v572_v17  ;;  %v2731_v29 = vld [vmem:[#allocation5_spill] sm:$0xff] }
  0x4f   :  { %v1456_v38 = vpop.eup %1455  ;;  %v1935_v44 = vadd.f32 %v275_v57, %v274_v26  ;;  %v1937_v63 = vadd.f32 %v284_v16, %v283_v50  ;;  %v351_v52 = vadd.f32 %v322_v8, %v321_v40  ;;  %v1942_v9 = vadd.f32 %v293_v12, %v292_v61  ;;  %v2732_v0 = vld [vmem:[#allocation9_spill] sm:$0xff] }
  0x50   :  { %2726 = vst [vmem:[#allocation3_spill] sm:$0xff] %v1932_v27  ;;  %v1940_v11 = vrot.slane %v1456_v38, %v1917_v48  ;;  %v329_v54 = vmul.f32 %v2730_v15, %v1550_v18  ;;  %v330_v60 = vmul.f32 %v2731_v29, %v1555_v19  ;;  %v579_v27 = vrot.slane %v1856_v37, 1 }
  0x51   :  { %2727 = vst [vmem:[#allocation11_spill] sm:$0xff] %v1935_v44  ;;  %2728 = vst [vmem:[#allocation7_spill] sm:$0xff] %v1937_v63  ;;  %v331_v26 = vmul.f32 %v2732_v0, %v1603_v35  ;;  %v578_v40 = vsel %vm577_vm5, %v576_v58, %v575_v4  ;;  %v364_v8 = vadd.f32 %v363_v45, %v362_v25 }
  0x52   :  { %2729 = vst [vmem:[#allocation10_spill] sm:$0xff] %v1942_v9  ;;  %v521_v50 = vmul.f32 %v1940_v11, %v1842_v1  ;;  %v522_v61 = vmul.f32 %v1940_v11, %v1848_v41  ;;  %v523_v18 = vmul.f32 %v1940_v11, %v1853_v30  ;;  %v524_v19 = vmul.f32 %v1940_v11, %v1856_v37  ;;  %v2740_v1 = vld [vmem:[#allocation15_spill] sm:$0xff] }
  0x53   :  { %v333_v57 = vadd.f32 %v314_v14, %v1884_v42  ;;  %v342_v16 = vadd.f32 %v318_v28, %v317_v55  ;;  %v352_v35 = vadd.f32 %v351_v52, %v323_v49  ;;  %v1966_v25 = vsel %vm580_vm6, %v579_v27, %v578_v40 }
  0x54   :  { %v540_v17 = vrot.slane %v521_v50, %v1917_v48  ;;  %v544_v12 = vrot.slane %v522_v61, %v1917_v48  ;;  %v548_v4 = vrot.slane %v523_v18, %v1917_v48  ;;  %v552_v45 = vrot.slane %v524_v19, %v1917_v48 }
  0x55   :  { %v369_v58 = vadd.f32 %v330_v60, %v329_v54  ;;  %v382_v38 = vmul.f32 %v2720_v47, %v1567_v23  ;;  %v383_v37 = vmul.f32 %v2721_v22, %v1572_v24  ;;  %v365_v42 = vrot.slane %v364_v8, 2 }
  0x56   :  { %v1973_v52 = vmul.f32 %v1966_v25, %v540_v17  ;;  %v1976_v14 = vmul.f32 %v1966_v25, %v544_v12  ;;  %v1979_v55 = vmul.f32 %v1966_v25, %v548_v4  ;;  %v1982_v28 = vmul.f32 %v1966_v25, %v552_v45 }
  0x57   :  { %v1984_v54 = vadd.f32 %v302_v20, %v301_v6  ;;  %v332_v49 = vmul.f32 %v1687_v21, %v1650_v56  ;;  %v334_v27 = vadd.f32 %v333_v57, %v1894_v13  ;;  %v353_v60 = vadd.f32 %v352_v35, %v324_v46 }
  0x58   :  { %2733 = vst [vmem:[#allocation4_spill] sm:$0xff] %v1973_v52  ;;  %v343_v50 = vadd.f32 %v342_v16, %v319_v51  ;;  %v1991_v40 = vmul.f32 %v1567_v23, %v1567_v23  ;;  %v1995_v61 = vmul.f32 %v1572_v24, %v1572_v24  ;;  %v1999_v18 = vmul.f32 %v2707_v5, %v2707_v5 }
  0x59   :  { %2734 = vst [vmem:[#allocation5_spill] sm:$0xff] %v1984_v54  ;;  %v384_v6 = vmul.f32 %v2724_v33, %v2707_v5  ;;  %v386_v56 = vmul.f32 %v1591_v31, %v1567_v23  ;;  %v387_v13 = vmul.f32 %v1596_v32, %v1572_v24  ;;  %v403_v51 = vadd.f32 %v383_v37, %v382_v38 }
  0x5a   :  { %v366_v20 = vadd.f32 %v365_v42, %v364_v8  ;;  %v370_v46 = vadd.f32 %v369_v58, %v331_v26  ;;  %v2009_v19 = vmul.f32 %v1666_v62, %v1666_v62  ;;  %v518_v57 = vmul.f32 %v1940_v11, %v1778_v7 }
  0x5b   :  { %v2014_v16 = vadd.f32 %v334_v27, %v1901_v3  ;;  %v354_v35 = vrot.slane %v353_v60, 4  ;;  %v385_v17 = vmul.f32 %v2725_v39, %v1666_v62  ;;  %v388_v12 = vmul.f32 %v2709_v36, %v2707_v5 }
  0x5c   :  { %v430_v26 = vmul.f32 %v2720_v47, %v2720_v47  ;;  %v431_v8 = vmul.f32 %v2721_v22, %v2721_v22  ;;  %v434_v4 = vmul.f32 %v1591_v31, %v2720_v47  ;;  %v435_v3 = vmul.f32 %v1596_v32, %v2721_v22 }
  0x5d   :  { %2735 = vst [vmem:[#allocation9_spill] sm:$0xff] %v2014_v16  ;;  %v404_v45 = vadd.f32 %v403_v51, %v384_v6  ;;  %v412_v58 = vadd.f32 %v387_v13, %v386_v56  ;;  %v438_v38 = vmul.f32 %v2730_v15, %v2720_v47  ;;  %v439_v37 = vmul.f32 %v2731_v29, %v2721_v22 }
  0x5e   :  { %v2033_v42 = vadd.f32 %v343_v50, %v1924_v34  ;;  %v367_v27 = vrot.slane %v366_v20, 1  ;;  %v2035_v63 = vadd.f32 %v370_v46, %v332_v49  ;;  %v528_v16 = vrot.slane %v518_v57, %v1917_v48 }
  0x5f   :  { %v2038_v44 = vadd.f32 %v354_v35, %v353_v60  ;;  %v389_v6 = vmul.f32 %v1678_v10, %v1666_v62  ;;  %v2044_v56 = vmul.f32 %v2730_v15, %v1567_v23  ;;  %v2048_v47 = vmul.f32 %v2731_v29, %v1572_v24 }
  0x60   :  { %2736 = vst [vmem:[#allocation18_spill] sm:$0xff] %v2035_v63  ;;  %v432_v22 = vmul.f32 %v2724_v33, %v2724_v33  ;;  %v436_v34 = vmul.f32 %v2709_v36, %v2724_v33  ;;  %v442_v49 = vadd.f32 %v431_v8, %v430_v26  ;;  %v451_v60 = vadd.f32 %v435_v3, %v434_v4 }
  0x61   :  { %v2054_v50 = vadd.f32 %v404_v45, %v385_v17  ;;  %v413_v13 = vadd.f32 %v412_v58, %v388_v12  ;;  %v440_v51 = vmul.f32 %v2732_v0, %v2724_v33  ;;  %v460_v23 = vadd.f32 %v439_v37, %v438_v38 }
  0x62   :  { %v2058_v46 = vadd.f32 %v367_v27, %v366_v20  ;;  %v433_v24 = vmul.f32 %v2725_v39, %v2725_v39  ;;  %v437_v57 = vmul.f32 %v1678_v10, %v2725_v39  ;;  %v2065_v35 = vmul.f32 %v1966_v25, %v528_v16 }
  0x63   :  { %v469_v17 = vmul.f32 %v1591_v31, %v1591_v31  ;;  %v470_v12 = vmul.f32 %v1596_v32, %v1596_v32  ;;  %v473_v33 = vmul.f32 %v2730_v15, %v1591_v31  ;;  %v474_v20 = vmul.f32 %v2731_v29, %v1596_v32 }
  0x64   :  { %2737 = vst [vmem:[#allocation19_spill] sm:$0xff] %v2058_v46  ;;  %v441_v26 = vmul.f32 %v1687_v21, %v2725_v39  ;;  %v443_v8 = vadd.f32 %v442_v49, %v432_v22  ;;  %v452_v4 = vadd.f32 %v451_v60, %v436_v34  ;;  %v618_v16 = vrot.slane %v1973_v52, 1 }
  0x65   :  { %v461_v3 = vadd.f32 %v460_v23, %v440_v51  ;;  %v471_v45 = vmul.f32 %v2709_v36, %v2709_v36  ;;  %v495_v58 = vmul.f32 %v2730_v15, %v2730_v15  ;;  %v496_v31 = vmul.f32 %v2731_v29, %v2731_v29 }
  0x66   :  { %v472_v32 = vmul.f32 %v1678_v10, %v1678_v10  ;;  %v597_v38 = vrot.slane %v2065_v35, 1  ;;  %v625_v39 = vrot.slane %v1976_v14, 1  ;;  %v626_v37 = vrot.slane %v1976_v14, 2 }
  0x67   :  { %v475_v27 = vmul.f32 %v2732_v0, %v2709_v36  ;;  %v477_v22 = vadd.f32 %v470_v12, %v469_v17  ;;  %v486_v34 = vadd.f32 %v474_v20, %v473_v33  ;;  %v632_v49 = vrot.slane %v1979_v55, 1 }
  0x68   :  { %v633_v29 = vrot.slane %v1979_v55, 2  ;;  %v634_v60 = vrot.slane %v1979_v55, 3  ;;  %v2097_v51 = vsub.f32 %v1869_v43, %v618_v16  ;;  %v497_v23 = vmul.f32 %v2732_v0, %v2732_v0 }
  0x69   :  { %v499_v63 = vadd.f32 %v496_v31, %v495_v58  ;;  %v598_v36 = vrot.slane %v2065_v35, 2  ;;  %v476_v12 = vmul.f32 %v1687_v21, %v1678_v10  ;;  %v690_v33 = vsub.f32 %v1863_v59, %v597_v38 }
  0x6a   :  { %2738 = vst [vmem:[#allocation20_spill] sm:$0xff] %v2097_v51  ;;  %v2108_v20 = vsub.f32 %v1871_v53, %v625_v39  ;;  %v2111_v16 = vsub.f32 %v1942_v9, %v626_v37  ;;  %v478_v15 = vadd.f32 %v477_v22, %v471_v45  ;;  %v487_v51 = vadd.f32 %v486_v34, %v475_v27  ;;  %v2741_v37 = vld [vmem:[#allocation13_spill] sm:$0xff] }
  0x6b   :  { %v2739_v58 = vmax.f32 %v1768_v2, 1e-30  ;;  %v599_v17 = vrot.slane %v2065_v35, 3  ;;  %v2119_v10 = vsub.f32 %v2740_v1, %v632_v49  ;;  %v2122_v59 = vsub.f32 %v1984_v54, %v633_v29 }
  0x6c   :  { %v2125_v38 = vsub.f32 %v2058_v46, %v634_v60  ;;  %v414_v39 = vadd.f32 %v413_v13, %v389_v6  ;;  %v498_v45 = vmul.f32 %v1687_v21, %v1687_v21  ;;  %v500_v2 = vadd.f32 %v499_v63, %v497_v23  ;;  %v2742_v46 = vld [vmem:[#allocation14_spill] sm:$0xff] }
  0x6d   :  { %1457 = vlog2.f32 %v2739_v58  ;;  %v2130_v27 = vsub.f32 %v2741_v37, %v598_v36  ;;  %v444_v22 = vadd.f32 %v443_v8, %v433_v24  ;;  %v689_v34 = vsub.f32 %v1778_v7, %v2065_v35 }
  0x6e   :  { %v738_v49 = vmax.f32 %v690_v33, 1e-30  ;;  %v786_v58 = vrot.slane %v690_v33, 7  ;;  %v453_v31 = vadd.f32 %v452_v4, %v437_v57  ;;  %v462_v29 = vadd.f32 %v461_v3, %v441_v26 }
  0x6f   :  { %v479_v52 = vadd.f32 %v478_v15, %v472_v32  ;;  %v600_v60 = vrot.slane %v2065_v35, 4  ;;  %v406_v6 = vrot.slane %v2054_v50, 4  ;;  %v488_v13 = vadd.f32 %v487_v51, %v476_v12 }
  0x70   :  { %v2137_v54 = vsub.f32 %v2742_v46, %v599_v17  ;;  %1459 = vlog2.f32 %v738_v49  ;;  %v356_v63 = vrot.slane %v2038_v44, 2  ;;  %v501_v24 = vadd.f32 %v500_v2, %v498_v45 }
  0x71   :  { %1461 = vrcp.f32 %v738_v49  ;;  %v788_v7 = vrot.slane %v2130_v27, 6  ;;  %v415_v8 = vrot.slane %v414_v39, 4  ;;  %v445_v23 = vrot.slane %v444_v22, 4 }
  0x72   :  { %2743 = vst [vmem:[#allocation15_spill] sm:$0xff] %v2137_v54  ;;  %v601_v57 = vrot.slane %v2065_v35, 5  ;;  %v787_v26 = vsel %vm562_vm0, %v786_v58, %v689_v34  ;;  %v454_v4 = vrot.slane %v453_v31, 4  ;;  %v463_v3 = vrot.slane %v462_v29, 4 }
  0x73   :  { %v480_v32 = vrot.slane %v479_v52, 4  ;;  %v2144_v15 = vsub.f32 %v1869_v43, %v600_v60  ;;  %v2148_v51 = vmul.f32 %v2732_v0, %v2707_v5  ;;  %v407_v36 = vadd.f32 %v406_v6, %v2054_v50 }
  0x74   :  { %v489_v17 = vrot.slane %v488_v13, 4  ;;  %v790_v12 = vrot.slane %v2137_v54, 5  ;;  %v394_v33 = vadd.f32 %v1995_v61, %v1991_v40  ;;  %v502_v45 = vrot.slane %v501_v24, 4 }
  0x75   :  { %2744 = vst [vmem:[#allocation13_spill] sm:$0xff] %v2144_v15  ;;  %v602_v2 = vrot.slane %v2065_v35, 6  ;;  %v789_v34 = vsel %vm565_vm1, %v788_v7, %v787_v26  ;;  %v2157_v43 = vadd.f32 %v356_v63, %v2038_v44  ;;  %v416_v49 = vadd.f32 %v415_v8, %v414_v39 }
  0x76   :  { %v446_v58 = vadd.f32 %v445_v23, %v444_v22  ;;  %v694_v5 = vsub.f32 %v1871_v53, %v601_v57  ;;  %v455_v0 = vadd.f32 %v454_v4, %v453_v31  ;;  %v464_v50 = vadd.f32 %v463_v3, %v462_v29 }
  0x77   :  { %v481_v60 = vadd.f32 %v480_v32, %v479_v52  ;;  %v792_v6 = vrot.slane %v2144_v15, 4  ;;  %v408_v54 = vrot.slane %v407_v36, 2  ;;  %v490_v40 = vadd.f32 %v489_v17, %v488_v13 }
  0x78   :  { %v603_v61 = vrot.slane %v2065_v35, 7  ;;  %v791_v9 = vsel %vm568_vm2, %v790_v12, %v789_v34  ;;  %v2165_v44 = vmul.f32 %v1687_v21, %v1666_v62  ;;  %v395_v39 = vadd.f32 %v394_v33, %v1999_v18  ;;  %v2745_v62 = vld [vmem:[#allocation16_spill] sm:$0xff] }
  0x79   :  { %v503_v22 = vadd.f32 %v502_v45, %v501_v24  ;;  %v695_v53 = vsub.f32 %v2740_v1, %v602_v2  ;;  %v358_v52 = vrot.slane %v2157_v43, 1  ;;  %v417_v31 = vrot.slane %v416_v49, 2  ;;  %v2746_v24 = vld [vmem:[#allocation12_spill] sm:$0xff] }
  0x7a   :  { %v1458_v46 = vpop.eup %1457  ;;  %v447_v29 = vrot.slane %v446_v58, 2  ;;  %v794_v63 = vrot.slane %v694_v5, 3  ;;  %v456_v7 = vrot.slane %v455_v0, 2  ;;  %v465_v13 = vrot.slane %v464_v50, 2 }
  0x7b   :  { %v482_v8 = vrot.slane %v481_v60, 2  ;;  %v793_v35 = vsel %vm571_vm3, %v792_v6, %v791_v9  ;;  %v409_v23 = vadd.f32 %v408_v54, %v407_v36  ;;  %v491_v57 = vrot.slane %v490_v40, 2 }
  0x7c   :  { %v510_v26 = vmul.f32 0.6931472, %v1458_v46  ;;  %v696_v21 = vsub.f32 %v2745_v62, %v603_v61  ;;  %v421_v18 = vadd.f32 %v2048_v47, %v2044_v56  ;;  %v504_v1 = vrot.slane %v503_v22, 2 }
  0x7d   :  { %v1460_v4 = vpop.eup %1459  ;;  %v519_v3 = vmul.f32 %v1940_v11, %v2746_v24  ;;  %v796_v32 = vrot.slane %v695_v53, 2  ;;  %v418_v12 = vadd.f32 %v417_v31, %v416_v49  ;;  %v448_v33 = vadd.f32 %v447_v29, %v446_v58 }
  0x7e   :  { %v1462_v17 = vpop.eup %1461  ;;  %v740_v45 = vmul.f32 0.6931472, %v1460_v4  ;;  %v795_v9 = vsel %vm574_vm4, %v794_v63, %v793_v35  ;;  %v457_v54 = vadd.f32 %v456_v7, %v455_v0  ;;  %v466_v36 = vadd.f32 %v465_v13, %v464_v50 }
  0x7f   :  { %v483_v46 = vadd.f32 %v482_v8, %v481_v60  ;;  %v2178_v2 = vrot.slane %v1462_v17, %v1917_v48  ;;  %v410_v34 = vrot.slane %v409_v23, 1  ;;  %v492_v6 = vadd.f32 %v491_v57, %v490_v40 }
  0x80   :  { %v2180_v56 = vadd.f32 %v740_v45, %v510_v26  ;;  %v798_v47 = vrot.slane %v696_v21, 1  ;;  %v505_v61 = vadd.f32 %v504_v1, %v503_v22  ;;  %v532_v62 = vrot.slane %v519_v3, %v1917_v48 }
  0x81   :  { %v751_v49 = vmul.f32 %v2178_v2, %v694_v5  ;;  %v797_v58 = vsel %vm577_vm5, %v796_v32, %v795_v9  ;;  %v419_v31 = vrot.slane %v418_v12, 1  ;;  %v449_v29 = vrot.slane %v448_v33, 1 }
  0x82   :  { %v752_v0 = vmul.f32 %v2178_v2, %v695_v53  ;;  %v753_v50 = vmul.f32 %v2178_v2, %v696_v21  ;;  %v458_v60 = vrot.slane %v457_v54, 1  ;;  %v467_v63 = vrot.slane %v466_v36, 1 }
  0x83   :  { %v484_v7 = vrot.slane %v483_v46, 1  ;;  %v769_v40 = vrot.slane %v751_v49, %v1917_v48  ;;  %v493_v13 = vrot.slane %v492_v6, 1  ;;  %v2191_v5 = vsel %vm580_vm6, %v798_v47, %v797_v58 }
  0x84   :  { %v773_v22 = vrot.slane %v752_v0, %v1917_v48  ;;  %v777_v8 = vrot.slane %v753_v50, %v1917_v48  ;;  %2747 = vst [vmem:[#allocation16_spill] sm:$0xff] %v2191_v5  ;;  %v506_v35 = vrot.slane %v505_v61, 1  ;;  %v2194_v57 = vmul.f32 %v1966_v25, %v532_v62 }
  0x85   :  { %v748_v53 = vmul.f32 %v2178_v2, %v2130_v27  ;;  %v2199_v26 = vmul.f32 %v2191_v5, %v769_v40  ;;  %v2202_v21 = vadd.f32 %v358_v52, %v2157_v43  ;;  %v2205_v4 = vadd.f32 %v395_v39, %v2009_v19 }
  0x86   :  { %v2208_v1 = vmul.f32 %v2191_v5, %v773_v22  ;;  %v2211_v3 = vmul.f32 %v2191_v5, %v777_v8  ;;  %v2213_v32 = vadd.f32 %v410_v34, %v409_v23  ;;  %v2215_v17 = vadd.f32 %v419_v31, %v418_v12 }
  0x87   :  { %2748 = vst [vmem:[#allocation12_spill] sm:$0xff] %v2202_v21  ;;  %v2218_v27 = vadd.f32 %v421_v18, %v2148_v51  ;;  %v450_v45 = vadd.f32 %v449_v29, %v448_v33  ;;  %v459_v9 = vadd.f32 %v458_v60, %v457_v54  ;;  %v468_v43 = vadd.f32 %v467_v63, %v466_v36  ;;  %v2751_v60 = vld [vmem:[#allocation3_spill] sm:$0xff] }
  0x88   :  { %2749 = vst [vmem:[#allocation21_spill] sm:$0xff] %v2213_v32  ;;  %2750 = vst [vmem:[#allocation22_spill] sm:$0xff] %v2215_v17  ;;  %v485_v52 = vadd.f32 %v484_v7, %v483_v46  ;;  %v494_v47 = vadd.f32 %v493_v13, %v492_v6  ;;  %v507_v19 = vadd.f32 %v506_v35, %v505_v61  ;;  %v604_v39 = vrot.slane %v2194_v57, 1  ;;  %v2752_v7 = vld [vmem:[#allocation11_spill] sm:$0xff] }
  0x89   :  { %v605_v62 = vrot.slane %v2194_v57, 2  ;;  %v757_v49 = vrot.slane %v748_v53, %v1917_v48  ;;  %v606_v23 = vrot.slane %v2194_v57, 3  ;;  %v627_v34 = vrot.slane %v1976_v14, 3 }
  0x8a   :  { %v628_v51 = vrot.slane %v1976_v14, 4  ;;  %v629_v18 = vrot.slane %v1976_v14, 5  ;;  %v630_v33 = vrot.slane %v1976_v14, 6  ;;  %v631_v54 = vrot.slane %v1976_v14, 7 }
  0x8b   :  { %v635_v36 = vrot.slane %v1979_v55, 4  ;;  %v636_v46 = vrot.slane %v1979_v55, 5  ;;  %v637_v6 = vrot.slane %v1979_v55, 6  ;;  %v638_v61 = vrot.slane %v1979_v55, 7 }
  0x8c   :  { %v639_v58 = vrot.slane %v1982_v28, 7  ;;  %v697_v29 = vsub.f32 %v2746_v24, %v2194_v57  ;;  %v698_v0 = vsub.f32 %v2741_v37, %v604_v39  ;;  %v2240_v50 = vmul.f32 %v2191_v5, %v757_v49 }
  0x8d   :  { %v699_v63 = vsub.f32 %v2751_v60, %v605_v62  ;;  %v700_v40 = vsub.f32 %v2752_v7, %v606_v23  ;;  %v724_v13 = vsub.f32 %v2202_v21, %v627_v34  ;;  %v725_v22 = vsub.f32 %v2213_v32, %v628_v51 }
  0x8e   :  { %v726_v8 = vsub.f32 %v450_v45, %v629_v18  ;;  %v727_v28 = vsub.f32 %v459_v9, %v630_v33  ;;  %v728_v35 = vsub.f32 %v468_v43, %v631_v54  ;;  %v733_v53 = vsub.f32 %v2215_v17, %v635_v36 }
  0x8f   :  { %v734_v31 = vsub.f32 %v459_v9, %v636_v46  ;;  %v735_v24 = vsub.f32 %v485_v52, %v637_v6  ;;  %v736_v12 = vsub.f32 %v494_v47, %v638_v61  ;;  %v737_v37 = vsub.f32 %v507_v19, %v639_v58 }
  0x90   :  { %v813_v39 = vrot.slane %v2240_v50, 1  ;;  %v814_v49 = vrot.slane %v2240_v50, 2  ;;  %v815_v62 = vrot.slane %v2240_v50, 3  ;;  %v834_v23 = vrot.slane %v2199_v26, 1 }
  0x91   :  { %v835_v34 = vrot.slane %v2199_v26, 2  ;;  %v836_v45 = vrot.slane %v2199_v26, 3  ;;  %v837_v43 = vrot.slane %v2199_v26, 4  ;;  %v838_v51 = vrot.slane %v2199_v26, 5 }
  0x92   :  { %v839_v9 = vrot.slane %v2199_v26, 6  ;;  %v840_v52 = vrot.slane %v2199_v26, 7  ;;  %v841_v47 = vrot.slane %v2208_v1, 1  ;;  %v842_v19 = vrot.slane %v2208_v1, 2 }
  0x93   :  { %v843_v18 = vrot.slane %v2208_v1, 3  ;;  %v844_v33 = vrot.slane %v2208_v1, 4  ;;  %v845_v54 = vrot.slane %v2208_v1, 5  ;;  %v846_v36 = vrot.slane %v2208_v1, 6 }
  0x94   :  { %v847_v46 = vrot.slane %v2208_v1, 7  ;;  %v848_v6 = vrot.slane %v2211_v3, 7  ;;  %v891_v61 = vsub.f32 %v698_v0, %v813_v39  ;;  %v892_v58 = vsub.f32 %v699_v63, %v814_v49  ;;  %v2760_v39 = vld [vmem:[#allocation18_spill] sm:$0xff] }
  0x95   :  { %v2753_v60 = vsub.f32 %v1848_v41, %v1976_v14  ;;  %v2272_v32 = vsub.f32 %v2108_v20, %v834_v23  ;;  %v2275_v15 = vsub.f32 %v2111_v16, %v835_v34  ;;  %v2277_v21 = vsub.f32 %v724_v13, %v836_v45 }
  0x96   :  { %v2279_v7 = vsub.f32 %v725_v22, %v837_v43  ;;  %v2281_v5 = vsub.f32 %v726_v8, %v838_v51  ;;  %v2283_v3 = vsub.f32 %v727_v28, %v839_v9  ;;  %v2285_v0 = vsub.f32 %v728_v35, %v840_v52  ;;  %v2757_v28 = vld [vmem:[#allocation9_spill] sm:$0xff] }
  0x97   :  { %v2269_v17 = vsub.f32 %v2753_v60, %v2199_v26  ;;  %v2756_v41 = vsub.f32 %v1853_v30, %v1979_v55  ;;  %v2294_v20 = vsub.f32 %v2119_v10, %v841_v47  ;;  %v2297_v16 = vsub.f32 %v2122_v59, %v842_v19  ;;  %v2763_v9 = vld [vmem:[#allocation17_spill] sm:$0xff] }
  0x98   :  { %2754 = vst [vmem:[#allocation3_spill] sm:$0xff] %v2283_v3  ;;  %2755 = vst [vmem:[#allocation23_spill] sm:$0xff] %v2285_v0  ;;  %v2300_v26 = vsub.f32 %v2125_v38, %v843_v18  ;;  %v2302_v63 = vsub.f32 %v733_v53, %v844_v33  ;;  %v2304_v13 = vsub.f32 %v734_v31, %v845_v54  ;;  %v931_v10 = vmax.f32 %v892_v58, 1e-30  ;;  %v2759_v53 = vld [vmem:[#allocation7_spill] sm:$0xff] }
  0x99   :  { %v2291_v14 = vsub.f32 %v2756_v41, %v2208_v1  ;;  %v2306_v22 = vsub.f32 %v735_v24, %v846_v36  ;;  %v2308_v8 = vsub.f32 %v736_v12, %v847_v46  ;;  %v890_v30 = vsub.f32 %v697_v29, %v2240_v50 }
  0x9a   :  { %v2311_v55 = vsub.f32 %v737_v37, %v848_v6  ;;  %v974_v1 = vrot.slane %v891_v61, 7  ;;  %v336_v59 = vrot.slane %v2757_v28, 4  ;;  %v423_v38 = vadd.f32 %v2218_v27, %v2165_v44  ;;  %v2762_v27 = vld [vmem:[#allocation10_spill] sm:$0xff]  ;;  %v2765_v6 = vld [vmem:[#allocation5_spill] sm:$0xff] }
  0x9b   :  { %v2758_v35 = vrot.slane %v2194_v57, 4  ;;  %v816_v24 = vrot.slane %v2240_v50, 4  ;;  %v345_v12 = vrot.slane %v2033_v42, 4  ;;  %v372_v49 = vrot.slane %v2760_v39, 4 }
  0x9c   :  { %v893_v29 = vsub.f32 %v700_v40, %v815_v62  ;;  %1463 = vlog2.f32 %v931_v10  ;;  %v397_v37 = vrot.slane %v2205_v4, 4  ;;  %v609_v23 = vrot.slane %v2194_v57, 6 }
  0x9d   :  { %v701_v31 = vsub.f32 %v2759_v53, %v2758_v35  ;;  %1465 = vrcp.f32 %v931_v10  ;;  %v976_v34 = vrot.slane %v892_v58, 6  ;;  %v2761_v44 = vrot.slane %v2194_v57, 5 }
  0x9e   :  { %v817_v43 = vrot.slane %v2240_v50, 5  ;;  %v975_v51 = vsel %vm562_vm0, %v974_v1, %v890_v30  ;;  %v2764_v52 = vrot.slane %v2763_v9, 1  ;;  %v337_v40 = vadd.f32 %v336_v59, %v2757_v28 }
  0x9f   :  { %v702_v45 = vsub.f32 %v2762_v27, %v2761_v44  ;;  %v424_v62 = vrot.slane %v423_v38, 4  ;;  %v2333_v19 = vsub.f32 %v701_v31, %v816_v24  ;;  %v346_v18 = vadd.f32 %v345_v12, %v2033_v42  ;;  %v2766_v24 = vld [vmem:[#allocation6_spill] sm:$0xff] }
  0xa0   :  { %v312_v47 = vadd.f32 %v2764_v52, %v2763_v9  ;;  %v373_v33 = vadd.f32 %v372_v49, %v2760_v39  ;;  %v610_v54 = vrot.slane %v2194_v57, 7  ;;  %v978_v36 = vrot.slane %v893_v29, 5  ;;  %v2767_v9 = vld [vmem:[#allocation15_spill] sm:$0xff] }
  0xa1   :  { %v398_v46 = vadd.f32 %v397_v37, %v2205_v4  ;;  %v703_v61 = vsub.f32 %v2765_v6, %v609_v23  ;;  %v818_v58 = vrot.slane %v2240_v50, 6  ;;  %v977_v60 = vsel %vm565_vm1, %v976_v34, %v975_v51 }
  0xa2   :  { %v2342_v41 = vsub.f32 %v702_v45, %v817_v43  ;;  %v338_v30 = vrot.slane %v337_v40, 2  ;;  %v425_v10 = vadd.f32 %v424_v62, %v423_v38  ;;  %v980_v1 = vrot.slane %v2333_v19, 4 }
  0xa3   :  { %v347_v42 = vrot.slane %v346_v18, 2  ;;  %v704_v28 = vsub.f32 %v312_v47, %v610_v54  ;;  %v819_v59 = vrot.slane %v2240_v50, 7  ;;  %v979_v57 = vsel %vm568_vm2, %v978_v36, %v977_v60 }
  0xa4   :  { %v374_v35 = vrot.slane %v373_v33, 2  ;;  %v399_v4 = vrot.slane %v398_v46, 2  ;;  %v896_v31 = vsub.f32 %v703_v61, %v818_v58  ;;  %v520_v12 = vmul.f32 %v1940_v11, %v2766_v24 }
  0xa5   :  { %v982_v39 = vrot.slane %v2342_v41, 3  ;;  %v426_v49 = vrot.slane %v425_v10, 2  ;;  %v981_v37 = vsel %vm571_vm3, %v980_v1, %v979_v57  ;;  %v339_v38 = vadd.f32 %v338_v30, %v337_v40 }
  0xa6   :  { %v348_v23 = vadd.f32 %v347_v42, %v346_v18  ;;  %v897_v34 = vsub.f32 %v704_v28, %v819_v59  ;;  %v375_v27 = vadd.f32 %v374_v35, %v373_v33  ;;  %v400_v45 = vadd.f32 %v399_v4, %v398_v46 }
  0xa7   :  { %v984_v50 = vrot.slane %v896_v31, 2  ;;  %v536_v51 = vrot.slane %v520_v12, %v1917_v48  ;;  %v749_v52 = vmul.f32 %v2178_v2, %v2767_v9  ;;  %v983_v11 = vsel %vm574_vm4, %v982_v39, %v981_v37 }
  0xa8   :  { %v427_v62 = vadd.f32 %v426_v49, %v425_v10  ;;  %v340_v40 = vrot.slane %v339_v38, 1  ;;  %v349_v18 = vrot.slane %v348_v23, 1  ;;  %v986_v33 = vrot.slane %v897_v34, 1 }
  0xa9   :  { %v1464_v44 = vpop.eup %1463  ;;  %v376_v46 = vrot.slane %v375_v27, 1  ;;  %v401_v6 = vrot.slane %v400_v45, 1  ;;  %v985_v58 = vsel %vm577_vm5, %v984_v50, %v983_v11  ;;  %v585_v60 = vmul.f32 %v1966_v25, %v536_v51 }
  0xaa   :  { %v1466_v43 = vpop.eup %1465  ;;  %v933_v47 = vmul.f32 0.6931472, %v1464_v44  ;;  %v761_v30 = vrot.slane %v749_v52, %v1917_v48  ;;  %v428_v42 = vrot.slane %v427_v62, 1  ;;  %v350_v59 = vadd.f32 %v349_v18, %v348_v23 }
  0xab   :  { %v2356_v54 = vrot.slane %v1466_v43, %v1917_v48  ;;  %v2370_v35 = vsel %vm580_vm6, %v986_v33, %v985_v58  ;;  %v377_v4 = vadd.f32 %v376_v46, %v375_v27  ;;  %v611_v12 = vrot.slane %v585_v60, 1  ;;  %v2769_v43 = vld [vmem:[#allocation4_spill] sm:$0xff] }
  0xac   :  { %v2359_v36 = vadd.f32 %v933_v47, %v2180_v56  ;;  %v341_v56 = vadd.f32 %v340_v40, %v339_v38  ;;  %v613_v39 = vrot.slane %v585_v60, 3  ;;  %v2382_v23 = vadd.f32 %v428_v42, %v427_v62  ;;  %v2770_v40 = vld [vmem:[#allocation14_spill] sm:$0xff] }
  0xad   :  { %v944_v61 = vmul.f32 %v2356_v54, %v896_v31  ;;  %v941_v10 = vmul.f32 %v2356_v54, %v893_v29  ;;  %v945_v1 = vmul.f32 %v2356_v54, %v897_v34  ;;  %v402_v31 = vadd.f32 %v401_v6, %v400_v45  ;;  %v2768_v29 = vld [vmem:[#allocation16_spill] sm:$0xff] }
  0xae   :  { %v2376_v49 = vmul.f32 %v2768_v29, %v761_v30  ;;  %v612_v34 = vrot.slane %v585_v60, 2  ;;  %v614_v44 = vrot.slane %v585_v60, 4  ;;  %v615_v50 = vrot.slane %v585_v60, 5  ;;  %v2771_v30 = vld [vmem:[#allocation11_spill] sm:$0xff] }
  0xaf   :  { %v961_v28 = vrot.slane %v944_v61, %v1917_v48  ;;  %v965_v57 = vrot.slane %v945_v1, %v1917_v48  ;;  %v949_v37 = vrot.slane %v941_v10, %v1917_v48  ;;  %v616_v27 = vrot.slane %v585_v60, 6 }
  0xb0   :  { %v617_v45 = vrot.slane %v585_v60, 7  ;;  %v619_v51 = vrot.slane %v2769_v43, 2  ;;  %v620_v9 = vrot.slane %v2769_v43, 3  ;;  %v621_v52 = vrot.slane %v2769_v43, 4 }
  0xb1   :  { %v2373_v25 = vmul.f32 %v2370_v35, %v961_v28  ;;  %v2380_v38 = vmul.f32 %v2370_v35, %v965_v57  ;;  %v622_v47 = vrot.slane %v2769_v43, 5  ;;  %v706_v18 = vsub.f32 %v2770_v40, %v611_v12  ;;  %v2772_v28 = vld [vmem:[#allocation12_spill] sm:$0xff]  ;;  %v2773_v12 = vld [vmem:[#allocation19_spill] sm:$0xff] }
  0xb2   :  { %v708_v33 = vsub.f32 %v341_v56, %v613_v39  ;;  %v820_v62 = vrot.slane %v2376_v49, 1  ;;  %v822_v46 = vrot.slane %v2376_v49, 3  ;;  %v2393_v6 = vmul.f32 %v2370_v35, %v949_v37  ;;  %v2774_v39 = vld [vmem:[#allocation13_spill] sm:$0xff] }
  0xb3   :  { %v624_v61 = vrot.slane %v2769_v43, 7  ;;  %v705_v58 = vsub.f32 %v2766_v24, %v585_v60  ;;  %v707_v10 = vsub.f32 %v2771_v30, %v612_v34  ;;  %v821_v1 = vrot.slane %v2376_v49, 2  ;;  %v2775_v30 = vld [vmem:[#allocation21_spill] sm:$0xff] }
  0xb4   :  { %v709_v42 = vsub.f32 %v350_v59, %v614_v44  ;;  %v710_v57 = vsub.f32 %v2772_v28, %v615_v50  ;;  %v711_v56 = vsub.f32 %v2773_v12, %v616_v27  ;;  %v750_v40 = vmul.f32 %v2178_v2, %v2774_v39 }
  0xb5   :  { %v2403_v11 = vsub.f32 %v377_v4, %v617_v45  ;;  %v2406_v37 = vsub.f32 %v2759_v53, %v619_v51  ;;  %v2408_v0 = vsub.f32 %v350_v59, %v620_v9  ;;  %v2410_v24 = vsub.f32 %v402_v31, %v621_v52 }
  0xb6   :  { %v899_v60 = vsub.f32 %v706_v18, %v820_v62  ;;  %v901_v34 = vsub.f32 %v708_v33, %v822_v46  ;;  %v999_v44 = vrot.slane %v2393_v6, 1  ;;  %v1001_v50 = vrot.slane %v2393_v6, 3 }
  0xb7   :  { %v2415_v27 = vsub.f32 %v2775_v30, %v622_v47  ;;  %v823_v2 = vrot.slane %v2376_v49, 4  ;;  %v900_v4 = vsub.f32 %v707_v10, %v821_v1  ;;  %v1000_v45 = vrot.slane %v2393_v6, 2 }
  0xb8   :  { %v765_v53 = vrot.slane %v750_v40, %v1917_v48  ;;  %v898_v59 = vsub.f32 %v705_v58, %v2376_v49  ;;  %v1020_v31 = vrot.slane %v2373_v25, 1  ;;  %v1021_v51 = vrot.slane %v2373_v25, 2 }
  0xb9   :  { %v1022_v9 = vrot.slane %v2373_v25, 3  ;;  %v1023_v52 = vrot.slane %v2373_v25, 4  ;;  %v1024_v47 = vrot.slane %v2373_v25, 5  ;;  %v1025_v18 = vrot.slane %v2373_v25, 6 }
  0xba   :  { %v1026_v33 = vrot.slane %v2373_v25, 7  ;;  %v1027_v62 = vrot.slane %v2380_v38, 7  ;;  %v1062_v46 = vsub.f32 %v899_v60, %v999_v44  ;;  %v1064_v10 = vsub.f32 %v901_v34, %v1001_v50 }
  0xbb   :  { %v824_v58 = vrot.slane %v2376_v49, 5  ;;  %v902_v1 = vsub.f32 %v709_v42, %v823_v2  ;;  %v1002_v28 = vrot.slane %v2393_v6, 4  ;;  %v1063_v12 = vsub.f32 %v900_v4, %v1000_v45 }
  0xbc   :  { %v1061_v39 = vsub.f32 %v898_v59, %v2393_v6  ;;  %v2435_v30 = vsub.f32 %v2294_v20, %v1020_v31  ;;  %v2438_v3 = vsub.f32 %v2297_v16, %v1021_v51  ;;  %v2441_v38 = vsub.f32 %v2300_v26, %v1022_v9 }
  0xbd   :  { %v2444_v60 = vsub.f32 %v2302_v63, %v1023_v52  ;;  %v2447_v42 = vsub.f32 %v2304_v13, %v1024_v47  ;;  %v2450_v34 = vsub.f32 %v2306_v22, %v1025_v18  ;;  %v2453_v44 = vsub.f32 %v2308_v8, %v1026_v33 }
  0xbe   :  { %v2456_v20 = vsub.f32 %v2311_v55, %v1027_v62  ;;  %v1094_v16 = vmax.f32 %v1064_v10, 1e-30  ;;  %v1132_v50 = vrot.slane %v1062_v46, 7  ;;  %v803_v26 = vmul.f32 %v2768_v29, %v765_v53  ;;  %v2779_v55 = vld [vmem:[#allocation22_spill] sm:$0xff] }
  0xbf   :  { %2776 = vst [vmem:[#allocation9_spill] sm:$0xff] %v2453_v44  ;;  %v825_v2 = vrot.slane %v2376_v49, 6  ;;  %v942_v63 = vmul.f32 %v2356_v54, %v2333_v19  ;;  %v1134_v13 = vrot.slane %v1063_v12, 6  ;;  %v903_v4 = vsub.f32 %v710_v57, %v824_v58 }
  0xc0   :  { %2777 = vst [vmem:[#allocation7_spill] sm:$0xff] %v2456_v20  ;;  %v1003_v22 = vrot.slane %v2393_v6, 5  ;;  %1467 = vlog2.f32 %v1094_v16  ;;  %v1133_v8 = vsel %vm562_vm0, %v1132_v50, %v1061_v39  ;;  %v2778_v45 = vrot.slane %v2769_v43, 6 }
  0xc1   :  { %v943_v31 = vmul.f32 %v2356_v54, %v2342_v41  ;;  %v2469_v29 = vsub.f32 %v902_v1, %v1002_v28  ;;  %1469 = vrcp.f32 %v1094_v16  ;;  %v720_v53 = vsub.f32 %v2382_v23, %v624_v61  ;;  %v2780_v28 = vld [vmem:[#allocation8_spill] sm:$0xff] }
  0xc2   :  { %v719_v59 = vsub.f32 %v2779_v55, %v2778_v45  ;;  %v826_v19 = vrot.slane %v2376_v49, 7  ;;  %v827_v57 = vrot.slane %v803_v26, 1  ;;  %v1136_v51 = vrot.slane %v1064_v10, 5  ;;  %v2782_v16 = vld [vmem:[#allocation20_spill] sm:$0xff] }
  0xc3   :  { %v904_v9 = vsub.f32 %v711_v56, %v825_v2  ;;  %v953_v52 = vrot.slane %v942_v63, %v1917_v48  ;;  %v1004_v47 = vrot.slane %v2393_v6, 6  ;;  %v1135_v18 = vsel %vm565_vm1, %v1134_v13, %v1133_v8 }
  0xc4   :  { %v828_v33 = vrot.slane %v803_v26, 2  ;;  %v829_v62 = vrot.slane %v803_v26, 3  ;;  %v830_v46 = vrot.slane %v803_v26, 4  ;;  %v1066_v41 = vsub.f32 %v903_v4, %v1003_v22 }
  0xc5   :  { %v831_v54 = vrot.slane %v803_v26, 5  ;;  %v832_v58 = vrot.slane %v803_v26, 6  ;;  %v957_v1 = vrot.slane %v943_v31, %v1917_v48  ;;  %v1138_v23 = vrot.slane %v2469_v29, 4 }
  0xc6   :  { %v833_v49 = vrot.slane %v803_v26, 7  ;;  %v905_v61 = vsub.f32 %v2403_v11, %v826_v19  ;;  %v1005_v56 = vrot.slane %v2393_v6, 7  ;;  %v1137_v10 = vsel %vm568_vm2, %v1136_v51, %v1135_v18 }
  0xc7   :  { %v2781_v12 = vsub.f32 %v2780_v28, %v2769_v43  ;;  %v907_v50 = vsub.f32 %v2782_v16, %v827_v57  ;;  %v2488_v2 = vmul.f32 %v2370_v35, %v953_v52  ;;  %v1067_v63 = vsub.f32 %v904_v9, %v1004_v47 }
  0xc8   :  { %v908_v13 = vsub.f32 %v2406_v37, %v828_v33  ;;  %v909_v4 = vsub.f32 %v2408_v0, %v829_v62  ;;  %v910_v11 = vsub.f32 %v2410_v24, %v830_v46  ;;  %v1140_v6 = vrot.slane %v1066_v41, 3 }
  0xc9   :  { %v2484_v39 = vsub.f32 %v2781_v12, %v803_v26  ;;  %v911_v22 = vsub.f32 %v2415_v27, %v831_v54  ;;  %v912_v8 = vsub.f32 %v719_v59, %v832_v58  ;;  %v2495_v43 = vmul.f32 %v2370_v35, %v957_v1 }
  0xca   :  { %v1139_v26 = vsel %vm571_vm3, %v1138_v23, %v1137_v10  ;;  %v913_v45 = vsub.f32 %v720_v53, %v833_v49  ;;  %v1006_v55 = vrot.slane %v2488_v2, 1  ;;  %v1007_v31 = vrot.slane %v2488_v2, 2 }
  0xcb   :  { %v1068_v19 = vsub.f32 %v905_v61, %v1005_v56  ;;  %v1008_v37 = vrot.slane %v2488_v2, 3  ;;  %v1009_v0 = vrot.slane %v2488_v2, 4  ;;  %v1010_v24 = vrot.slane %v2488_v2, 5 }
  0xcc   :  { %v1142_v57 = vrot.slane %v1067_v63, 2  ;;  %v1011_v27 = vrot.slane %v2488_v2, 6  ;;  %v1012_v35 = vrot.slane %v2488_v2, 7  ;;  %v1013_v59 = vrot.slane %v2495_v43, 1 }
  0xcd   :  { %v1141_v53 = vsel %vm574_vm4, %v1140_v6, %v1139_v26  ;;  %v1468_v51 = vpop.eup %1467  ;;  %v1014_v9 = vrot.slane %v2495_v43, 2  ;;  %v1015_v52 = vrot.slane %v2495_v43, 3  ;;  %v1016_v47 = vrot.slane %v2495_v43, 4 }
  0xce   :  { %v1017_v18 = vrot.slane %v2495_v43, 5  ;;  %v1470_v33 = vpop.eup %1469  ;;  %v1018_v62 = vrot.slane %v2495_v43, 6  ;;  %v1019_v46 = vrot.slane %v2495_v43, 7  ;;  %v1096_v54 = vmul.f32 0.6931472, %v1468_v51 }
  0xcf   :  { %v1144_v58 = vrot.slane %v1068_v19, 1  ;;  %v1069_v1 = vsub.f32 %v2484_v39, %v2488_v2  ;;  %v1070_v23 = vsub.f32 %v907_v50, %v1006_v55  ;;  %v1103_v49 = vrot.slane %v1470_v33, %v1917_v48 }
  0xd0   :  { %v1143_v61 = vsel %vm577_vm5, %v1142_v57, %v1141_v53  ;;  %v1071_v56 = vsub.f32 %v908_v13, %v1007_v31  ;;  %v1072_v10 = vsub.f32 %v909_v4, %v1008_v37  ;;  %v1073_v28 = vsub.f32 %v910_v11, %v1009_v0  ;;  %v2784_v31 = vld [vmem:[#allocation3_spill] sm:$0xff] }
  0xd1   :  { %v2518_v12 = vadd.f32 %v1096_v54, %v2359_v36  ;;  %v1104_v16 = vmul.f32 %v1103_v49, %v2469_v29  ;;  %v1105_v6 = vmul.f32 %v1103_v49, %v1066_v41  ;;  %v1106_v26 = vmul.f32 %v1103_v49, %v1067_v63  ;;  %v2785_v37 = vld [vmem:[#allocation23_spill] sm:$0xff] }
  0xd2   :  { %v1107_v51 = vmul.f32 %v1103_v49, %v1068_v19  ;;  %v1074_v40 = vsub.f32 %v911_v22, %v1010_v24  ;;  %v1075_v20 = vsub.f32 %v912_v8, %v1011_v27  ;;  %v1076_v44 = vsub.f32 %v913_v45, %v1012_v35 }
  0xd3   :  { %2783 = vst [vmem:[#allocation18_spill] sm:$0xff] %v2518_v12  ;;  %v1145_v39 = vsel %vm580_vm6, %v1144_v58, %v1143_v61  ;;  %v1111_v50 = vrot.slane %v1104_v16, %v1917_v48  ;;  %v1115_v2 = vrot.slane %v1105_v6, %v1917_v48  ;;  %v1119_v13 = vrot.slane %v1106_v26, %v1917_v48 }
  0xd4   :  { %v1123_v4 = vrot.slane %v1107_v51, %v1917_v48  ;;  %v1077_v36 = vsub.f32 %v2269_v17, %v2495_v43  ;;  %v1078_v29 = vsub.f32 %v2272_v32, %v1013_v59  ;;  %v1079_v41 = vsub.f32 %v2275_v15, %v1014_v9 }
  0xd5   :  { %v1080_v63 = vsub.f32 %v2277_v21, %v1015_v52  ;;  %v1081_v11 = vsub.f32 %v2279_v7, %v1016_v47  ;;  %v1147_v22 = vmul.f32 %v1145_v39, %v1111_v50  ;;  %v1148_v8 = vmul.f32 %v1145_v39, %v1115_v2 }
  0xd6   :  { %v1150_v45 = vmul.f32 %v1145_v39, %v1123_v4  ;;  %v1082_v55 = vsub.f32 %v2281_v5, %v1017_v18  ;;  %v1083_v19 = vsub.f32 %v2784_v31, %v1018_v62  ;;  %v1084_v0 = vsub.f32 %v2785_v37, %v1019_v46 }
  0xd7   :  { %v1149_v24 = vmul.f32 %v1145_v39, %v1119_v13  ;;  %v1155_v57 = vrot.slane %v1147_v22, 1  ;;  %v1156_v17 = vrot.slane %v1147_v22, 2  ;;  %v1157_v43 = vrot.slane %v1147_v22, 3 }
  0xd8   :  { %v1158_v32 = vrot.slane %v1147_v22, 4  ;;  %v1159_v27 = vrot.slane %v1147_v22, 5  ;;  %v1160_v15 = vrot.slane %v1147_v22, 6  ;;  %v1161_v35 = vrot.slane %v1147_v22, 7 }
  0xd9   :  { %v1162_v21 = vrot.slane %v1148_v8, 1  ;;  %v1163_v59 = vrot.slane %v1148_v8, 2  ;;  %v1164_v7 = vrot.slane %v1148_v8, 3  ;;  %v1165_v53 = vrot.slane %v1148_v8, 4 }
  0xda   :  { %v1166_v9 = vrot.slane %v1148_v8, 5  ;;  %v1167_v52 = vrot.slane %v1148_v8, 6  ;;  %v1168_v47 = vrot.slane %v1148_v8, 7  ;;  %v1169_v5 = vrot.slane %v1149_v24, 1 }
  0xdb   :  { %v1170_v18 = vrot.slane %v1149_v24, 2  ;;  %v1171_v33 = vrot.slane %v1149_v24, 3  ;;  %v1172_v62 = vrot.slane %v1149_v24, 4  ;;  %v1173_v46 = vrot.slane %v1149_v24, 5 }
  0xdc   :  { %v1174_v54 = vrot.slane %v1149_v24, 6  ;;  %v1175_v58 = vrot.slane %v1149_v24, 7  ;;  %v1176_v49 = vrot.slane %v1150_v45, 7  ;;  %v1202_v61 = vsub.f32 %v1069_v1, %v1147_v22 }
  0xdd   :  { %v1203_v16 = vsub.f32 %v1070_v23, %v1155_v57  ;;  %v1204_v6 = vsub.f32 %v1071_v56, %v1156_v17  ;;  %v1205_v26 = vsub.f32 %v1072_v10, %v1157_v43  ;;  %v1206_v51 = vsub.f32 %v1073_v28, %v1158_v32 }
  0xde   :  { %v1207_v39 = vsub.f32 %v1074_v40, %v1159_v27  ;;  %v1208_v50 = vsub.f32 %v1075_v20, %v1160_v15  ;;  %v1209_v2 = vsub.f32 %v1076_v44, %v1161_v35  ;;  %v2535_v13 = vsub.f32 %v1077_v36, %v1148_v8  ;;  %v2789_v27 = vld [vmem:[#allocation2_spill] sm:$0xff] }
  0xdf   :  { %v2537_v4 = vsub.f32 %v1078_v29, %v1162_v21  ;;  %v2539_v31 = vsub.f32 %v1079_v41, %v1163_v59  ;;  %v2541_v37 = vsub.f32 %v1080_v63, %v1164_v7  ;;  %v2543_v12 = vsub.f32 %v1081_v11, %v1165_v53  ;;  %v2790_v35 = vld [vmem:[#allocation18_spill] sm:$0xff] }
  0xe0   :  { %v2545_v48 = vsub.f32 %v1082_v55, %v1166_v9  ;;  %v2547_v1 = vsub.f32 %v1083_v19, %v1167_v52  ;;  %v2549_v23 = vsub.f32 %v1084_v0, %v1168_v47  ;;  %v2786_v40 = vsub.f32 %v2291_v14, %v2373_v25  ;;  %v2787_v14 = vld [vmem:[#allocation9_spill] sm:$0xff] }
  0xe1   :  { %v2557_v20 = vsub.f32 %v2435_v30, %v1169_v5  ;;  %v2560_v56 = vsub.f32 %v2438_v3, %v1170_v18  ;;  %v2563_v10 = vsub.f32 %v2441_v38, %v1171_v33  ;;  %v2566_v28 = vsub.f32 %v2444_v60, %v1172_v62  ;;  %v2788_v30 = vld [vmem:[#allocation7_spill] sm:$0xff] }
  0xe2   :  { %v2554_v44 = vsub.f32 %v2786_v40, %v1149_v24  ;;  %v2569_v36 = vsub.f32 %v2447_v42, %v1173_v46  ;;  %v2572_v29 = vsub.f32 %v2450_v34, %v1174_v54  ;;  %v2575_v25 = vsub.f32 %v2787_v14, %v1175_v58 }
  0xe3   :  { %v2578_v41 = vsub.f32 %v2788_v30, %v1176_v49  ;;  %v1227_v3 = vmax.f32 %v1206_v51, 1e-30  ;;  %v1260_v63 = vrot.slane %v1203_v16, 7  ;;  %v1262_v11 = vrot.slane %v1204_v6, 6 }
  0xe4   :  { %v1264_v38 = vrot.slane %v1205_v26, 5  ;;  %v1266_v22 = vrot.slane %v1206_v51, 4  ;;  %v1268_v42 = vrot.slane %v1207_v39, 3  ;;  %v1270_v34 = vrot.slane %v1208_v50, 2 }
  0xe5   :  { %1471 = vlog2.f32 %v1227_v3  ;;  %v1261_v60 = vsel %vm562_vm0, %v1260_v63, %v1202_v61  ;;  %v1272_v55 = vrot.slane %v1209_v2, 1 }
  0xe6   :  { %1473 = vrcp.f32 %v1227_v3  ;;  %v1263_v8 = vsel %vm565_vm1, %v1262_v11, %v1261_v60 }
  0xe7   :  { %v1265_v45 = vsel %vm568_vm2, %v1264_v38, %v1263_v8 }
  0xe8   :  { %v1267_v19 = vsel %vm571_vm3, %v1266_v22, %v1265_v45 }
  0xe9   :  { %v1269_v0 = vsel %vm574_vm4, %v1268_v42, %v1267_v19 }
  0xea   :  { %v1271_v24 = vsel %vm577_vm5, %v1270_v34, %v1269_v0 }
  0xeb   :  { %v1273_v57 = vsel %vm580_vm6, %v1272_v55, %v1271_v24 }
  0xf2   :  { %v1472_v17 = vpop.eup %1471 }
  0xf3   :  { %v1474_v43 = vpop.eup %1473  ;;  %v1229_v32 = vmul.f32 0.6931472, %v1472_v17 }
  0xf4   :  { %v1236_v15 = vrot.slane %v1474_v43, %v2789_v27 }
  0xf5   :  { %v2589_v21 = vadd.f32 %v1229_v32, %v2790_v35 }
  0xf6   :  { %v1237_v59 = vmul.f32 %v1236_v15, %v1207_v39  ;;  %v1238_v7 = vmul.f32 %v1236_v15, %v1208_v50  ;;  %v1239_v53 = vmul.f32 %v1236_v15, %v1209_v2 }
  0xf8   :  { %v1243_v9 = vrot.slane %v1237_v59, %v2789_v27  ;;  %v1247_v52 = vrot.slane %v1238_v7, %v2789_v27  ;;  %v1251_v47 = vrot.slane %v1239_v53, %v2789_v27 }
  0xfa   :  { %v1275_v5 = vmul.f32 %v1273_v57, %v1243_v9  ;;  %v2594_v18 = vmul.f32 %v1273_v57, %v1247_v52  ;;  %v1277_v33 = vmul.f32 %v1273_v57, %v1251_v47 }
  0xfc   :  { %v1281_v62 = vrot.slane %v1275_v5, 1  ;;  %v1282_v46 = vrot.slane %v1275_v5, 2  ;;  %v1283_v54 = vrot.slane %v1275_v5, 3  ;;  %v1284_v58 = vrot.slane %v1275_v5, 4 }
  0xfd   :  { %v1285_v49 = vrot.slane %v1275_v5, 5  ;;  %v1286_v61 = vrot.slane %v1275_v5, 6  ;;  %v1287_v16 = vrot.slane %v1275_v5, 7  ;;  %v1288_v6 = vrot.slane %v2594_v18, 1 }
  0xfe   :  { %v1289_v26 = vrot.slane %v2594_v18, 2  ;;  %v1290_v51 = vrot.slane %v2594_v18, 3  ;;  %v1291_v39 = vrot.slane %v2594_v18, 4  ;;  %v1292_v50 = vrot.slane %v2594_v18, 5 }
  0xff   :  { %v1293_v2 = vrot.slane %v2594_v18, 6  ;;  %v1294_v40 = vrot.slane %v2594_v18, 7  ;;  %v1295_v14 = vrot.slane %v1277_v33, 7  ;;  %v1313_v30 = vsub.f32 %v2535_v13, %v1275_v5 }
 0x100   :  { %v1314_v3 = vsub.f32 %v2537_v4, %v1281_v62  ;;  %v1315_v63 = vsub.f32 %v2539_v31, %v1282_v46  ;;  %v1316_v11 = vsub.f32 %v2541_v37, %v1283_v54  ;;  %v1317_v38 = vsub.f32 %v2543_v12, %v1284_v58 }
 0x101   :  { %v1318_v22 = vsub.f32 %v2545_v48, %v1285_v49  ;;  %v1319_v60 = vsub.f32 %v2547_v1, %v1286_v61  ;;  %v1320_v42 = vsub.f32 %v2549_v23, %v1287_v16  ;;  %v1321_v8 = vsub.f32 %v2554_v44, %v2594_v18 }
 0x102   :  { %v1322_v34 = vsub.f32 %v2557_v20, %v1288_v6  ;;  %v1323_v13 = vsub.f32 %v2560_v56, %v1289_v26  ;;  %v1324_v4 = vsub.f32 %v2563_v10, %v1290_v51  ;;  %v1325_v31 = vsub.f32 %v2566_v28, %v1291_v39 }
 0x103   :  { %v1326_v37 = vsub.f32 %v2569_v36, %v1292_v50  ;;  %v1327_v12 = vsub.f32 %v2572_v29, %v1293_v2  ;;  %v1328_v48 = vsub.f32 %v2575_v25, %v1294_v40  ;;  %v1329_v1 = vsub.f32 %v2578_v41, %v1295_v14 }
 0x104   :  { %v1330_v23 = vmax.f32 %v1318_v22, 1e-30  ;;  %v1358_v45 = vrot.slane %v1314_v3, 7  ;;  %v1360_v55 = vrot.slane %v1315_v63, 6  ;;  %v1362_v44 = vrot.slane %v1316_v11, 5 }
 0x105   :  { %v1364_v19 = vrot.slane %v1317_v38, 4  ;;  %v1366_v56 = vrot.slane %v1318_v22, 3  ;;  %v1368_v28 = vrot.slane %v1319_v60, 2  ;;  %v1370_v29 = vrot.slane %v1320_v42, 1 }
 0x106   :  { %1475 = vlog2.f32 %v1330_v23  ;;  %v1359_v20 = vsel %vm562_vm0, %v1358_v45, %v1313_v30 }
 0x107   :  { %1477 = vrcp.f32 %v1330_v23  ;;  %v1361_v10 = vsel %vm565_vm1, %v1360_v55, %v1359_v20 }
 0x108   :  { %v1363_v36 = vsel %vm568_vm2, %v1362_v44, %v1361_v10 }
 0x109   :  { %v1365_v25 = vsel %vm571_vm3, %v1364_v19, %v1363_v36 }
 0x10a   :  { %v1367_v41 = vsel %vm574_vm4, %v1366_v56, %v1365_v25 }
 0x10b   :  { %v1369_v0 = vsel %vm577_vm5, %v1368_v28, %v1367_v41 }
 0x10c   :  { %v1371_v24 = vsel %vm580_vm6, %v1370_v29, %v1369_v0 }
 0x113   :  { %v1476_v57 = vpop.eup %1475 }
 0x114   :  { %v1478_v17 = vpop.eup %1477  ;;  %v1332_v43 = vmul.f32 0.6931472, %v1476_v57 }
 0x115   :  { %v1339_v32 = vrot.slane %v1478_v17, %v2789_v27 }
 0x116   :  { %v1333_v15 = vadd.f32 %v1332_v43, %v2589_v21 }
 0x117   :  { %v1340_v35 = vmul.f32 %v1339_v32, %v1319_v60  ;;  %v1341_v59 = vmul.f32 %v1339_v32, %v1320_v42 }
 0x119   :  { %v1345_v7 = vrot.slane %v1340_v35, %v2789_v27  ;;  %v1349_v53 = vrot.slane %v1341_v59, %v2789_v27 }
 0x11b   :  { %v1373_v9 = vmul.f32 %v1371_v24, %v1345_v7  ;;  %v1374_v52 = vmul.f32 %v1371_v24, %v1349_v53 }
 0x11d   :  { %v1377_v47 = vrot.slane %v1373_v9, 1  ;;  %v1378_v5 = vrot.slane %v1373_v9, 2  ;;  %v1379_v18 = vrot.slane %v1373_v9, 3  ;;  %v1380_v33 = vrot.slane %v1373_v9, 4 }
 0x11e   :  { %v1381_v62 = vrot.slane %v1373_v9, 5  ;;  %v1382_v46 = vrot.slane %v1373_v9, 6  ;;  %v1383_v54 = vrot.slane %v1373_v9, 7  ;;  %v1384_v58 = vrot.slane %v1374_v52, 7 }
 0x11f   :  { %v1394_v49 = vsub.f32 %v1321_v8, %v1373_v9  ;;  %v1395_v61 = vsub.f32 %v1322_v34, %v1377_v47  ;;  %v1396_v16 = vsub.f32 %v1323_v13, %v1378_v5  ;;  %v1397_v21 = vsub.f32 %v1324_v4, %v1379_v18 }
 0x120   :  { %v1398_v6 = vsub.f32 %v1325_v31, %v1380_v33  ;;  %v1399_v26 = vsub.f32 %v1326_v37, %v1381_v62  ;;  %v1400_v51 = vsub.f32 %v1327_v12, %v1382_v46  ;;  %v1401_v39 = vsub.f32 %v1328_v48, %v1383_v54 }
 0x121   :  { %v1402_v50 = vsub.f32 %v1329_v1, %v1384_v58  ;;  %v1426_v2 = vrot.slane %v1395_v61, 7  ;;  %v1428_v40 = vrot.slane %v1396_v16, 6  ;;  %v1430_v14 = vrot.slane %v1397_v21, 5 }
 0x122   :  { %v1403_v30 = vmax.f32 %v1400_v51, 1e-30  ;;  %v1432_v3 = vrot.slane %v1398_v6, 4  ;;  %v1434_v11 = vrot.slane %v1399_v26, 3  ;;  %v1436_v22 = vrot.slane %v1400_v51, 2 }
 0x123   :  { %v1427_v63 = vsel %vm562_vm0, %v1426_v2, %v1394_v49  ;;  %v1438_v42 = vrot.slane %v1401_v39, 1 }
 0x124   :  { %1479 = vlog2.f32 %v1403_v30  ;;  %v1429_v38 = vsel %vm565_vm1, %v1428_v40, %v1427_v63 }
 0x125   :  { %1481 = vrcp.f32 %v1403_v30  ;;  %v1431_v60 = vsel %vm568_vm2, %v1430_v14, %v1429_v38 }
 0x126   :  { %v1433_v8 = vsel %vm571_vm3, %v1432_v3, %v1431_v60 }
 0x127   :  { %v1435_v34 = vsel %vm574_vm4, %v1434_v11, %v1433_v8 }
 0x128   :  { %v1437_v13 = vsel %vm577_vm5, %v1436_v22, %v1435_v34 }
 0x129   :  { %v1439_v4 = vsel %vm580_vm6, %v1438_v42, %v1437_v13 }
 0x131   :  { %v1480_v31 = vpop.eup %1479 }
 0x132   :  { %v1482_v37 = vpop.eup %1481  ;;  %v1405_v12 = vmul.f32 0.6931472, %v1480_v31 }
 0x133   :  { %v1412_v48 = vrot.slane %v1482_v37, %v2789_v27 }
 0x134   :  { %v1406_v1 = vadd.f32 %v1405_v12, %v1333_v15 }
 0x135   :  { %v1413_v23 = vmul.f32 %v1412_v48, %v1401_v39 }
 0x137   :  { %v1417_v45 = vrot.slane %v1413_v23, %v2789_v27 }
 0x139   :  { %v1441_v55 = vmul.f32 %v1439_v4, %v1417_v45 }
 0x13b   :  { %v1443_v44 = vrot.slane %v1441_v55, 7 }
 0x13d   :  { %v1445_v19 = vsub.f32 %v1402_v50, %v1443_v44 }
 0x13f   :  { %v1446_v20 = vmax.f32 %v1445_v19, 1e-30 }
 0x141   :  { %1483 = vlog2.f32 %v1446_v20 }
 0x14e   :  { %v1484_v56 = vpop.eup %1483 }
 0x14f   :  { %v1448_v10 = vmul.f32 0.6931472, %v1484_v56 }
 0x151   :  { %v1449_v28 = vadd.f32 %v1448_v10, %v1406_v1 }
 0x153   :  { %1450 = vst [vmem:[%s2645_s1] sm:$0x1] %v1449_v28 }

</bundles_post_ra>
